<compile_context>
chip_gen: v5e
topology: v5e:2x2
jax: 0.10.0
libtpu: 0.0.40
codegen_flags: <defaults>
</compile_context>

<pallas_src>
import functools
import math

import jax
import jax.numpy as jnp
from jax import lax
from jax.experimental import pallas as pl
from jax.experimental.pallas import tpu as pltpu

RELU_MAX = 20.0  # the module's "ReLU" is Hardtanh(0, 20)


def _round_up(v, m):
    return (v + m - 1) // m * m


# ----------------------------- fused Pallas kernel ------------------------- #

def _fused_block_kernel(x_ref, mask_ref, w1_ref, sh1_ref, wc_ref, shc_ref,
                        w3_ref, shout_ref, *rest,
                        Ws, width_p, scale, has_shortcut):
    """One grid step: a (Cin_p, L) channel-major tile, L = B*H*W on the lane axis."""
    if has_shortcut:
        wsc_ref, o_ref = rest
    else:
        (o_ref,) = rest

    f32 = jnp.float32
    bf16 = jnp.bfloat16

    x = x_ref[0]                                   # (Cin_p, L) bf16
    L = x.shape[-1]
    mask = mask_ref[...]                           # (9*width_p, L) f32 0/1 tap validity

    # conv1 (1x1, all `scale` branches fused) + bn1 + hardtanh(0, 20)
    y1 = jnp.dot(w1_ref[...], x, preferred_element_type=f32)          # (scale*width_p, L)
    y1 = jnp.clip(y1 + sh1_ref[...], 0.0, RELU_MAX)

    # shortcut branch (skip the matmul entirely for the identity shortcut)
    if has_shortcut:
        res = jnp.dot(wsc_ref[...], x, preferred_element_type=f32)    # (Cout_p, L)
    else:
        res = x.astype(f32)                        # identity: Cin_p == Cout_p

    # tap order matches the 3x3 kernel raster order (kh, kw) = (dh+1, dw+1)
    shifts = tuple(dh * Ws + dw for dh in (-1, 0, 1) for dw in (-1, 0, 1))

    sp = None
    sp_blocks = []
    for i in range(scale):
        blk = y1[i * width_p:(i + 1) * width_p, :]                    # sublane-aligned slice
        sp = blk if i == 0 else sp + blk                              # (width_p, L) f32

        # 3x3 same-pad conv: 9 zero-padded taps via XLU lane rolls + boundary mask,
        # stacked along sublanes, then ONE MXU matmul with contraction 9*width_p.
        taps = jnp.concatenate(
            [sp if s == 0 else pltpu.roll(sp, shift=(-s) % L, axis=1) for s in shifts],
            axis=0)                                                   # (9*width_p, L) f32
        taps = (taps * mask).astype(bf16)
        y = jnp.dot(wc_ref[i], taps, preferred_element_type=f32)      # (width_p, L)
        sp = jnp.clip(y + shc_ref[i], 0.0, RELU_MAX)
        sp_blocks.append(sp)

    # conv3 (1x1) over all branches at once (replaces the channel concat) + bn3 + add + relu
    sp_all = jnp.concatenate(sp_blocks, axis=0).astype(bf16)          # (scale*width_p, L)
    out = jnp.dot(w3_ref[...], sp_all, preferred_element_type=f32) + res
    out = jnp.clip(out + shout_ref[...], 0.0, RELU_MAX)               # (Cout_p, L)
    o_ref[0] = out.astype(o_ref.dtype)


# ----------------------------- wrapper helpers ------------------------------ #

def _pick_samples_per_step(N, HW):
    """Smallest divisor B of N such that the lane width B*HW is 128-aligned."""
    for B in range(1, N + 1):
        if N % B == 0 and (B * HW) % 128 == 0:
            return B
    return N  # fallback: one step over the whole batch (block == full extent)


def _build_tap_masks(Hs, Ws, B, width_p):
    """(9*width_p, B*Hs*Ws) 0/1 validity mask per 3x3 tap (implements zero padding)."""
    p = jnp.arange(Hs * Ws)
    h, w = p // Ws, p % Ws
    rows = []
    for dh in (-1, 0, 1):
        for dw in (-1, 0, 1):
            valid = (h + dh >= 0) & (h + dh < Hs) & (w + dw >= 0) & (w + dw < Ws)
            rows.append(valid.astype(jnp.float32))
    m = jnp.stack(rows, axis=0)                     # (9, HW)
    m = jnp.repeat(m, width_p, axis=0)              # (9*width_p, HW), block order = tap order
    return jnp.tile(m, (1, B))                      # (9*width_p, B*HW)


def _prepare_weights(P, Cin, Cout, Cin_p, Cout_p, width_p):
    """Fold inference-mode BN scale into the conv weights, zero-pad channels to multiples
    of 8 and lay the weights out for the fused kernel.  Matmul operands are bf16."""
    width, scale = P["width"], P["scale"]
    SWp = scale * width_p
    f32, bf16 = jnp.float32, jnp.bfloat16

    sc1, sh1 = P["bn1"]
    w1 = (P["w1"] * sc1[None, :]).T                 # (scale*width, Cin)
    w1p = jnp.zeros((SWp, Cin_p), f32)
    sh1p = jnp.zeros((SWp, 1), f32)
    for i in range(scale):
        r0 = i * width_p
        w1p = w1p.at[r0:r0 + width, :Cin].set(w1[i * width:(i + 1) * width, :])
        sh1p = sh1p.at[r0:r0 + width, 0].set(sh1[i * width:(i + 1) * width])

    wcp = jnp.zeros((scale, width_p, 9 * width_p), f32)
    shcp = jnp.zeros((scale, width_p, 1), f32)
    for i in range(scale):
        scb, shb = P["bns"][i]
        w9 = P["convs"][i] * scb[None, None, :]     # (9, cin, cout), tap order kh*3+kw
        for t in range(9):
            c0 = t * width_p
            wcp = wcp.at[i, :width, c0:c0 + width].set(w9[t].T)
        shcp = shcp.at[i, :width, 0].set(shb)

    sc3, sh3 = P["bn3"]
    w3 = (P["w3"] * sc3[None, :]).T                 # (Cout, scale*width)
    w3p = jnp.zeros((Cout_p, SWp), f32)
    for i in range(scale):
        c0 = i * width_p
        w3p = w3p.at[:Cout, c0:c0 + width].set(w3[:, i * width:(i + 1) * width])

    shoutp = jnp.zeros((Cout_p, 1), f32)
    if P["has_shortcut"]:
        scsc, shsc = P["bnsc"]
        wsc = (P["wsc"] * scsc[None, :]).T          # (Cout, Cin)
        wscp = jnp.zeros((Cout_p, Cin_p), f32).at[:Cout, :Cin].set(wsc).astype(bf16)
        shoutp = shoutp.at[:Cout, 0].set(sh3 + shsc)
    else:
        wscp = None
        shoutp = shoutp.at[:Cout, 0].set(sh3)

    return (w1p.astype(bf16), sh1p, wcp.astype(bf16), shcp,
            w3p.astype(bf16), shoutp, wscp)


# ----------------------------- forward --------------------------------------- #

def eres2netv2_block_forward(x_nchw, P, samples_per_step=None):
    N, Cin, H, W = x_nchw.shape
    stride = P["stride"]
    width, scale = P["width"], P["scale"]
    Cout = P["out_planes"]
    has_shortcut = P["has_shortcut"]

    # conv1's stride-s 1x1 conv == spatial subsampling followed by a 1x1 conv.
    xs = x_nchw[:, :, ::stride, ::stride] if stride != 1 else x_nchw
    Hs, Ws = xs.shape[2], xs.shape[3]
    HW = Hs * Ws

    width_p = _round_up(width, 8)
    Cin_p = _round_up(Cin, 8)
    Cout_p = _round_up(Cout, 8)
    SWp = scale * width_p

    # Lane packing: B samples per grid step so the activation/output lane dim is a
    # multiple of 128 (unmasked stores, wider MXU N, amortized per-step overhead).
    B = samples_per_step or _pick_samples_per_step(N, HW)
    if N % B:
        B = N
    G = N // B
    L = B * HW

    x_cm = xs.reshape(N, Cin, HW)
    if Cin_p != Cin:
        x_cm = jnp.pad(x_cm, ((0, 0), (0, Cin_p - Cin), (0, 0)))
    if B == 1:
        x_pack = x_cm
    else:
        x_pack = (x_cm.reshape(G, B, Cin_p, HW)
                  .transpose(0, 2, 1, 3).reshape(G, Cin_p, L))
    x_pack = x_pack.astype(jnp.bfloat16)

    mask = _build_tap_masks(Hs, Ws, B, width_p)                    # (9*width_p, L) f32
    w1p, sh1p, wcp, shcp, w3p, shoutp, wscp = _prepare_weights(
        P, Cin, Cout, Cin_p, Cout_p, width_p)

    const_operands = [mask, w1p, sh1p, wcp, shcp, w3p, shoutp]
    if has_shortcut:
        const_operands.append(wscp)

    kernel = functools.partial(
        _fused_block_kernel, Ws=Ws, width_p=width_p, scale=scale,
        has_shortcut=has_shortcut)

    flops = 2 * G * L * (Cin_p * SWp + scale * 9 * width_p * width_p
                         + SWp * Cout_p + (Cin_p * Cout_p if has_shortcut else 0))
    bytes_accessed = (x_pack.size * x_pack.dtype.itemsize + G * Cout_p * L * 4
                      + sum(int(a.size) * a.dtype.itemsize for a in const_operands))
    cost = pl.CostEstimate(flops=flops, transcendentals=0, bytes_accessed=bytes_accessed)

    def build_call(single_buffer_consts):
        def const_spec(shape):
            ndim = len(shape)
            kwargs = {}
            if single_buffer_consts:
                kwargs["pipeline_mode"] = pl.Buffered(1)   # constants: no double-buffering
            return pl.BlockSpec(shape, lambda g: (0,) * ndim, **kwargs)

        in_specs = [pl.BlockSpec((1, Cin_p, L), lambda g: (g, 0, 0))]
        in_specs += [const_spec(tuple(a.shape)) for a in const_operands]

        return pl.pallas_call(
            kernel,
            out_shape=jax.ShapeDtypeStruct((G, Cout_p, L), jnp.float32),
            grid=(G,),
            in_specs=in_specs,
            out_specs=pl.BlockSpec((1, Cout_p, L), lambda g: (g, 0, 0)),
            compiler_params=pltpu.CompilerParams(dimension_semantics=("parallel",)),
            cost_estimate=cost,
        )

    args = (x_pack, *const_operands)
    try:
        out = build_call(single_buffer_consts=True)(*args)
    except Exception:
        # pipeline_mode / pl.Buffered(1) unsupported by this jax version: the constants
        # are only a few KiB here, so double-buffering them is harmless.
        out = build_call(single_buffer_consts=False)(*args)

    out = out[:, :Cout, :]                                         # drop channel padding
    if B == 1:
        return out.reshape(N, Cout, Hs, Ws)
    return (out.reshape(G, Cout, B, HW)
            .transpose(0, 2, 1, 3).reshape(N, Cout, Hs, Ws))


# ----------------------------- parameters ----------------------------------- #

def init_params(key, in_planes, planes, stride=1, baseWidth=26, scale=2, expansion=2):
    width = int(math.floor(planes * (baseWidth / 64.0)))
    ws = width * scale
    out_planes = planes * expansion
    eps = 1e-5
    keys = iter(jax.random.split(key, 64))

    def conv_pw(cin, cout):
        return 0.1 * jax.random.normal(next(keys), (cin, cout), jnp.float32)

    def conv_3x3(c):
        # tap-major (9, cin, cout); tap index = kh*3 + kw
        return 0.1 * jax.random.normal(next(keys), (9, c, c), jnp.float32)

    def bn(c):
        gamma = 0.5 + jax.random.uniform(next(keys), (c,), jnp.float32)
        beta = 0.1 * jax.random.normal(next(keys), (c,), jnp.float32)
        mean = 0.1 * jax.random.normal(next(keys), (c,), jnp.float32)
        var = 0.5 + jax.random.uniform(next(keys), (c,), jnp.float32)
        sc = gamma / jnp.sqrt(var + eps)
        sh = beta - mean * sc
        return sc, sh

    P = dict(width=width, scale=scale, stride=stride, out_planes=out_planes)
    P["w1"] = conv_pw(in_planes, ws)
    P["bn1"] = bn(ws)
    P["convs"] = [conv_3x3(width) for _ in range(scale)]
    P["bns"] = [bn(width) for _ in range(scale)]
    P["w3"] = conv_pw(ws, out_planes)
    P["bn3"] = bn(out_planes)
    P["has_shortcut"] = (stride != 1) or (in_planes != out_planes)
    if P["has_shortcut"]:
        P["wsc"] = conv_pw(in_planes, out_planes)
        P["bnsc"] = bn(out_planes)
    return P


# ----------------------------- pure-JAX reference --------------------------- #

def ref_forward(x_nchw, P):
    x = jnp.transpose(x_nchw, (0, 2, 3, 1))
    s = P["stride"]
    xs = x[:, ::s, ::s, :] if s != 1 else x
    relu = lambda v: jnp.clip(v, 0.0, RELU_MAX)

    def bn(v, p):
        sc, sh = p
        return v * sc.reshape(1, 1, 1, -1) + sh.reshape(1, 1, 1, -1)

    def pw(xx, w):
        return jnp.einsum("nhwc,cd->nhwd", xx, w)

    def c3(xx, w9):
        w4 = w9.reshape(3, 3, w9.shape[1], w9.shape[2])
        return lax.conv_general_dilated(
            xx, w4, (1, 1), "SAME", dimension_numbers=("NHWC", "HWIO", "NHWC"))

    out = relu(bn(pw(xs, P["w1"]), P["bn1"]))
    width, scale = P["width"], P["scale"]
    spx = [out[..., i * width:(i + 1) * width] for i in range(scale)]
    pieces = []
    sp = None
    for i in range(scale):
        sp = spx[i] if i == 0 else sp + spx[i]
        sp = relu(bn(c3(sp, P["convs"][i]), P["bns"][i]))
        pieces.append(sp)
    out = jnp.concatenate(pieces, axis=-1)
    residual = bn(pw(xs, P["wsc"]), P["bnsc"]) if P["has_shortcut"] else xs
    out = relu(bn(pw(out, P["w3"]), P["bn3"]) + residual)
    return jnp.transpose(out, (0, 3, 1, 2))


# ----------------------------- main ------------------------------------------ #

if __name__ == "__main__":
    root = jax.random.PRNGKey(0)

    test_cases = [
        # (N, in_planes, planes, H, W, stride)
        (2, 16, 16, 16, 16, 1),   # conv shortcut; HW=256 lane-dense per sample, grid=(2,)
        (2, 32, 16, 16, 16, 1),   # identity shortcut (in_planes == planes*expansion)
        (2, 16, 16, 16, 16, 2),   # stride 2 -> HW=64, 2 samples packed per step (lanes=128)
    ]

    for idx, (N, cin, planes, H, W, stride) in enumerate(test_cases):
        kx, kp = jax.random.split(jax.random.fold_in(root, idx))
        x = jax.random.normal(kx, (N, cin, H, W), jnp.float32)
        P = init_params(kp, cin, planes, stride=stride)

        out = jax.block_until_ready(eres2netv2_block_forward(x, P))
        Hs, Ws = -(-H // stride), -(-W // stride)
        assert out.shape == (N, P["out_planes"], Hs, Ws), out.shape

        with jax.default_matmul_precision("highest"):
            ref = jax.block_until_ready(ref_forward(x, P))

        max_err = float(jnp.max(jnp.abs(out - ref)))
        rel_l2 = float(jnp.linalg.norm(out - ref) / (jnp.linalg.norm(ref) + 1e-12))
        # bf16 MXU operands with f32 accumulation -> bf16-appropriate tolerances.
        assert jnp.allclose(out, ref, atol=6e-2, rtol=6e-2), (idx, max_err)
        assert rel_l2 < 2.5e-2, (idx, rel_l2)

    print("KERNEL_OK")
</pallas_src>

<mosaic_0001>
module attributes {stable_mosaic.version = 11 : i64} {
  func.func @_fused_block_kernel(%arg0: i32, %arg1: memref<1x16x256xbf16, #tpu.memory_space<vmem>>, %arg2: memref<72x256xf32, #tpu.memory_space<vmem>>, %arg3: memref<16x16xbf16, #tpu.memory_space<vmem>>, %arg4: memref<16x1xf32, #tpu.memory_space<vmem>>, %arg5: memref<2x8x72xbf16, #tpu.memory_space<vmem>>, %arg6: memref<2x8x1xf32, #tpu.memory_space<vmem>>, %arg7: memref<32x16xbf16, #tpu.memory_space<vmem>>, %arg8: memref<32x1xf32, #tpu.memory_space<vmem>>, %arg9: memref<32x16xbf16, #tpu.memory_space<vmem>>, %arg10: memref<1x32x256xf32, #tpu.memory_space<vmem>>) attributes {dimension_semantics = [#tpu.dimension_semantics<parallel>], iteration_bounds = array<i64: 2>, scalar_prefetch = 0 : i64, scratch_operands = 0 : i64, tpu.core_type = #tpu.core_type<tc>, window_params = [{transform_indices = @transform_0, window_bounds = array<i64: 1, 16, 256>}, {pipeline_mode = #tpu.pipeline_mode<synchronous>, transform_indices = @transform_1, window_bounds = array<i64: 72, 256>}, {pipeline_mode = #tpu.pipeline_mode<synchronous>, transform_indices = @transform_2, window_bounds = array<i64: 16, 16>}, {pipeline_mode = #tpu.pipeline_mode<synchronous>, transform_indices = @transform_3, window_bounds = array<i64: 16, 1>}, {pipeline_mode = #tpu.pipeline_mode<synchronous>, transform_indices = @transform_4, window_bounds = array<i64: 2, 8, 72>}, {pipeline_mode = #tpu.pipeline_mode<synchronous>, transform_indices = @transform_5, window_bounds = array<i64: 2, 8, 1>}, {pipeline_mode = #tpu.pipeline_mode<synchronous>, transform_indices = @transform_6, window_bounds = array<i64: 32, 16>}, {pipeline_mode = #tpu.pipeline_mode<synchronous>, transform_indices = @transform_7, window_bounds = array<i64: 32, 1>}, {pipeline_mode = #tpu.pipeline_mode<synchronous>, transform_indices = @transform_8, window_bounds = array<i64: 32, 16>}, {transform_indices = @transform_9, window_bounds = array<i64: 1, 32, 256>}]} {
    %c0 = arith.constant 0 : index
    %c0_0 = arith.constant 0 : index
    %c0_1 = arith.constant 0 : index
    %0 = vector.load %arg1[%c0, %c0_0, %c0_1] : memref<1x16x256xbf16, #tpu.memory_space<vmem>>, vector<1x16x256xbf16>
    %1 = vector.shape_cast %0 : vector<1x16x256xbf16> to vector<16x256xbf16>
    %c0_2 = arith.constant 0 : index
    %c0_3 = arith.constant 0 : index
    %2 = vector.load %arg2[%c0_2, %c0_3] : memref<72x256xf32, #tpu.memory_space<vmem>>, vector<72x256xf32>
    %c0_4 = arith.constant 0 : index
    %c0_5 = arith.constant 0 : index
    %3 = vector.load %arg3[%c0_4, %c0_5] : memref<16x16xbf16, #tpu.memory_space<vmem>>, vector<16x16xbf16>
    %cst = arith.constant dense<0.000000e+00> : vector<16x256xf32>
    %4 = tpu.matmul %3, %1, %cst {dimension_numbers = #tpu.dot_dimension_numbers<[1], [0], [0], [1], [0, 0, 1, 1], [], []>} : vector<16x16xbf16>, vector<16x256xbf16>, vector<16x256xf32> -> vector<16x256xf32>
    %c0_6 = arith.constant 0 : index
    %c0_7 = arith.constant 0 : index
    %5 = vector.load %arg4[%c0_6, %c0_7] : memref<16x1xf32, #tpu.memory_space<vmem>>, vector<16x1xf32>
    %6 = vector.broadcast %5 : vector<16x1xf32> to vector<16x256xf32>
    %7 = arith.addf %4, %6 : vector<16x256xf32>
    %cst_8 = arith.constant 0.000000e+00 : f32
    %cst_9 = arith.constant 2.000000e+01 : f32
    %8 = vector.broadcast %cst_8 : f32 to vector<16x256xf32>
    %9 = arith.maximumf %8, %7 : vector<16x256xf32>
    %10 = vector.broadcast %cst_9 : f32 to vector<16x256xf32>
    %11 = arith.minimumf %10, %9 : vector<16x256xf32>
    %c0_10 = arith.constant 0 : index
    %c0_11 = arith.constant 0 : index
    %12 = vector.load %arg9[%c0_10, %c0_11] : memref<32x16xbf16, #tpu.memory_space<vmem>>, vector<32x16xbf16>
    %cst_12 = arith.constant dense<0.000000e+00> : vector<32x256xf32>
    %13 = tpu.matmul %12, %1, %cst_12 {dimension_numbers = #tpu.dot_dimension_numbers<[1], [0], [0], [1], [0, 0, 1, 1], [], []>} : vector<32x16xbf16>, vector<16x256xbf16>, vector<32x256xf32> -> vector<32x256xf32>
    %14 = vector.extract_strided_slice %11 {offsets = [0, 0], sizes = [8, 256], strides = [1, 1]} : vector<16x256xf32> to vector<8x256xf32>
    %c17_i32 = arith.constant 17 : i32
    %15 = tpu.dynamic_rotate %14 by %c17_i32 dim 1 : vector<8x256xf32>, i32 -> vector<8x256xf32>
    %c16_i32 = arith.constant 16 : i32
    %16 = tpu.dynamic_rotate %14 by %c16_i32 dim 1 : vector<8x256xf32>, i32 -> vector<8x256xf32>
    %c15_i32 = arith.constant 15 : i32
    %17 = tpu.dynamic_rotate %14 by %c15_i32 dim 1 : vector<8x256xf32>, i32 -> vector<8x256xf32>
    %c1_i32 = arith.constant 1 : i32
    %18 = tpu.dynamic_rotate %14 by %c1_i32 dim 1 : vector<8x256xf32>, i32 -> vector<8x256xf32>
    %c255_i32 = arith.constant 255 : i32
    %19 = tpu.dynamic_rotate %14 by %c255_i32 dim 1 : vector<8x256xf32>, i32 -> vector<8x256xf32>
    %c241_i32 = arith.constant 241 : i32
    %20 = tpu.dynamic_rotate %14 by %c241_i32 dim 1 : vector<8x256xf32>, i32 -> vector<8x256xf32>
    %c240_i32 = arith.constant 240 : i32
    %21 = tpu.dynamic_rotate %14 by %c240_i32 dim 1 : vector<8x256xf32>, i32 -> vector<8x256xf32>
    %c239_i32 = arith.constant 239 : i32
    %22 = tpu.dynamic_rotate %14 by %c239_i32 dim 1 : vector<8x256xf32>, i32 -> vector<8x256xf32>
    %23 = tpu.concatenate %15, %16, %17, %18, %14, %19, %20, %21, %22 in 0 : vector<8x256xf32>, vector<8x256xf32>, vector<8x256xf32>, vector<8x256xf32>, vector<8x256xf32>, vector<8x256xf32>, vector<8x256xf32>, vector<8x256xf32>, vector<8x256xf32> -> vector<72x256xf32>
    %24 = arith.mulf %23, %2 : vector<72x256xf32>
    %25 = arith.truncf %24 : vector<72x256xf32> to vector<72x256xbf16>
    %c0_13 = arith.constant 0 : index
    %c0_14 = arith.constant 0 : index
    %c0_15 = arith.constant 0 : index
    %26 = vector.load %arg5[%c0_13, %c0_14, %c0_15] : memref<2x8x72xbf16, #tpu.memory_space<vmem>>, vector<1x8x72xbf16>
    %27 = vector.shape_cast %26 : vector<1x8x72xbf16> to vector<8x72xbf16>
    %cst_16 = arith.constant dense<0.000000e+00> : vector<8x256xf32>
    %28 = tpu.matmul %27, %25, %cst_16 {dimension_numbers = #tpu.dot_dimension_numbers<[1], [0], [0], [1], [0, 0, 1, 1], [], []>} : vector<8x72xbf16>, vector<72x256xbf16>, vector<8x256xf32> -> vector<8x256xf32>
    %c0_17 = arith.constant 0 : index
    %c0_18 = arith.constant 0 : index
    %c0_19 = arith.constant 0 : index
    %29 = vector.load %arg6[%c0_17, %c0_18, %c0_19] : memref<2x8x1xf32, #tpu.memory_space<vmem>>, vector<1x8x1xf32>
    %30 = vector.shape_cast %29 : vector<1x8x1xf32> to vector<8x1xf32>
    %31 = vector.broadcast %30 : vector<8x1xf32> to vector<8x256xf32>
    %32 = arith.addf %28, %31 : vector<8x256xf32>
    %cst_20 = arith.constant 0.000000e+00 : f32
    %cst_21 = arith.constant 2.000000e+01 : f32
    %33 = vector.broadcast %cst_20 : f32 to vector<8x256xf32>
    %34 = arith.maximumf %33, %32 : vector<8x256xf32>
    %35 = vector.broadcast %cst_21 : f32 to vector<8x256xf32>
    %36 = arith.minimumf %35, %34 : vector<8x256xf32>
    %37 = vector.extract_strided_slice %11 {offsets = [8, 0], sizes = [8, 256], strides = [1, 1]} : vector<16x256xf32> to vector<8x256xf32>
    %38 = arith.addf %36, %37 : vector<8x256xf32>
    %c17_i32_22 = arith.constant 17 : i32
    %39 = tpu.dynamic_rotate %38 by %c17_i32_22 dim 1 : vector<8x256xf32>, i32 -> vector<8x256xf32>
    %c16_i32_23 = arith.constant 16 : i32
    %40 = tpu.dynamic_rotate %38 by %c16_i32_23 dim 1 : vector<8x256xf32>, i32 -> vector<8x256xf32>
    %c15_i32_24 = arith.constant 15 : i32
    %41 = tpu.dynamic_rotate %38 by %c15_i32_24 dim 1 : vector<8x256xf32>, i32 -> vector<8x256xf32>
    %c1_i32_25 = arith.constant 1 : i32
    %42 = tpu.dynamic_rotate %38 by %c1_i32_25 dim 1 : vector<8x256xf32>, i32 -> vector<8x256xf32>
    %c255_i32_26 = arith.constant 255 : i32
    %43 = tpu.dynamic_rotate %38 by %c255_i32_26 dim 1 : vector<8x256xf32>, i32 -> vector<8x256xf32>
    %c241_i32_27 = arith.constant 241 : i32
    %44 = tpu.dynamic_rotate %38 by %c241_i32_27 dim 1 : vector<8x256xf32>, i32 -> vector<8x256xf32>
    %c240_i32_28 = arith.constant 240 : i32
    %45 = tpu.dynamic_rotate %38 by %c240_i32_28 dim 1 : vector<8x256xf32>, i32 -> vector<8x256xf32>
    %c239_i32_29 = arith.constant 239 : i32
    %46 = tpu.dynamic_rotate %38 by %c239_i32_29 dim 1 : vector<8x256xf32>, i32 -> vector<8x256xf32>
    %47 = tpu.concatenate %39, %40, %41, %42, %38, %43, %44, %45, %46 in 0 : vector<8x256xf32>, vector<8x256xf32>, vector<8x256xf32>, vector<8x256xf32>, vector<8x256xf32>, vector<8x256xf32>, vector<8x256xf32>, vector<8x256xf32>, vector<8x256xf32> -> vector<72x256xf32>
    %48 = arith.mulf %47, %2 : vector<72x256xf32>
    %49 = arith.truncf %48 : vector<72x256xf32> to vector<72x256xbf16>
    %c1 = arith.constant 1 : index
    %c0_30 = arith.constant 0 : index
    %c0_31 = arith.constant 0 : index
    %50 = vector.load %arg5[%c1, %c0_30, %c0_31] : memref<2x8x72xbf16, #tpu.memory_space<vmem>>, vector<1x8x72xbf16>
    %51 = vector.shape_cast %50 : vector<1x8x72xbf16> to vector<8x72xbf16>
    %cst_32 = arith.constant dense<0.000000e+00> : vector<8x256xf32>
    %52 = tpu.matmul %51, %49, %cst_32 {dimension_numbers = #tpu.dot_dimension_numbers<[1], [0], [0], [1], [0, 0, 1, 1], [], []>} : vector<8x72xbf16>, vector<72x256xbf16>, vector<8x256xf32> -> vector<8x256xf32>
    %c1_33 = arith.constant 1 : index
    %c0_34 = arith.constant 0 : index
    %c0_35 = arith.constant 0 : index
    %53 = vector.load %arg6[%c1_33, %c0_34, %c0_35] : memref<2x8x1xf32, #tpu.memory_space<vmem>>, vector<1x8x1xf32>
    %54 = vector.shape_cast %53 : vector<1x8x1xf32> to vector<8x1xf32>
    %55 = vector.broadcast %54 : vector<8x1xf32> to vector<8x256xf32>
    %56 = arith.addf %52, %55 : vector<8x256xf32>
    %cst_36 = arith.constant 0.000000e+00 : f32
    %cst_37 = arith.constant 2.000000e+01 : f32
    %57 = vector.broadcast %cst_36 : f32 to vector<8x256xf32>
    %58 = arith.maximumf %57, %56 : vector<8x256xf32>
    %59 = vector.broadcast %cst_37 : f32 to vector<8x256xf32>
    %60 = arith.minimumf %59, %58 : vector<8x256xf32>
    %61 = tpu.concatenate %36, %60 in 0 : vector<8x256xf32>, vector<8x256xf32> -> vector<16x256xf32>
    %62 = arith.truncf %61 : vector<16x256xf32> to vector<16x256xbf16>
    %c0_38 = arith.constant 0 : index
    %c0_39 = arith.constant 0 : index
    %63 = vector.load %arg7[%c0_38, %c0_39] : memref<32x16xbf16, #tpu.memory_space<vmem>>, vector<32x16xbf16>
    %cst_40 = arith.constant dense<0.000000e+00> : vector<32x256xf32>
    %64 = tpu.matmul %63, %62, %cst_40 {dimension_numbers = #tpu.dot_dimension_numbers<[1], [0], [0], [1], [0, 0, 1, 1], [], []>} : vector<32x16xbf16>, vector<16x256xbf16>, vector<32x256xf32> -> vector<32x256xf32>
    %65 = arith.addf %64, %13 : vector<32x256xf32>
    %c0_41 = arith.constant 0 : index
    %c0_42 = arith.constant 0 : index
    %66 = vector.load %arg8[%c0_41, %c0_42] : memref<32x1xf32, #tpu.memory_space<vmem>>, vector<32x1xf32>
    %67 = vector.broadcast %66 : vector<32x1xf32> to vector<32x256xf32>
    %68 = arith.addf %65, %67 : vector<32x256xf32>
    %cst_43 = arith.constant 0.000000e+00 : f32
    %cst_44 = arith.constant 2.000000e+01 : f32
    %69 = vector.broadcast %cst_43 : f32 to vector<32x256xf32>
    %70 = arith.maximumf %69, %68 : vector<32x256xf32>
    %71 = vector.broadcast %cst_44 : f32 to vector<32x256xf32>
    %72 = arith.minimumf %71, %70 : vector<32x256xf32>
    %c0_45 = arith.constant 0 : index
    %c0_46 = arith.constant 0 : index
    %c0_47 = arith.constant 0 : index
    %73 = vector.load %arg10[%c0_45, %c0_46, %c0_47] : memref<1x32x256xf32, #tpu.memory_space<vmem>>, vector<1x32x256xf32>
    %74 = vector.shape_cast %73 : vector<1x32x256xf32> to vector<32x256xf32>
    %75 = vector.shape_cast %72 : vector<32x256xf32> to vector<1x32x256xf32>
    tpu.vector_store %arg10[%c0_45, %c0_46, %c0_47], %75 {strides = array<i32>} : memref<1x32x256xf32, #tpu.memory_space<vmem>>, vector<1x32x256xf32>,
    return
  }
  func.func @transform_0(%arg0: i32) -> (i32, i32, i32) {
    %c0_i32 = arith.constant 0 : i32
    %c0_i32_0 = arith.constant 0 : i32
    %c0_i32_1 = arith.constant 0 : i32
    return %arg0, %c0_i32, %c0_i32_0 : i32, i32, i32
  }
  func.func @transform_1(%arg0: i32) -> (i32, i32) {
    %c0_i32 = arith.constant 0 : i32
    %c0_i32_0 = arith.constant 0 : i32
    %c0_i32_1 = arith.constant 0 : i32
    return %c0_i32, %c0_i32_0 : i32, i32
  }
  func.func @transform_2(%arg0: i32) -> (i32, i32) {
    %c0_i32 = arith.constant 0 : i32
    %c0_i32_0 = arith.constant 0 : i32
    %c0_i32_1 = arith.constant 0 : i32
    return %c0_i32, %c0_i32_0 : i32, i32
  }
  func.func @transform_3(%arg0: i32) -> (i32, i32) {
    %c0_i32 = arith.constant 0 : i32
    %c0_i32_0 = arith.constant 0 : i32
    %c0_i32_1 = arith.constant 0 : i32
    return %c0_i32, %c0_i32_0 : i32, i32
  }
  func.func @transform_4(%arg0: i32) -> (i32, i32, i32) {
    %c0_i32 = arith.constant 0 : i32
    %c0_i32_0 = arith.constant 0 : i32
    %c0_i32_1 = arith.constant 0 : i32
    %c0_i32_2 = arith.constant 0 : i32
    return %c0_i32, %c0_i32_0, %c0_i32_1 : i32, i32, i32
  }
  func.func @transform_5(%arg0: i32) -> (i32, i32, i32) {
    %c0_i32 = arith.constant 0 : i32
    %c0_i32_0 = arith.constant 0 : i32
    %c0_i32_1 = arith.constant 0 : i32
    %c0_i32_2 = arith.constant 0 : i32
    return %c0_i32, %c0_i32_0, %c0_i32_1 : i32, i32, i32
  }
  func.func @transform_6(%arg0: i32) -> (i32, i32) {
    %c0_i32 = arith.constant 0 : i32
    %c0_i32_0 = arith.constant 0 : i32
    %c0_i32_1 = arith.constant 0 : i32
    return %c0_i32, %c0_i32_0 : i32, i32
  }
  func.func @transform_7(%arg0: i32) -> (i32, i32) {
    %c0_i32 = arith.constant 0 : i32
    %c0_i32_0 = arith.constant 0 : i32
    %c0_i32_1 = arith.constant 0 : i32
    return %c0_i32, %c0_i32_0 : i32, i32
  }
  func.func @transform_8(%arg0: i32) -> (i32, i32) {
    %c0_i32 = arith.constant 0 : i32
    %c0_i32_0 = arith.constant 0 : i32
    %c0_i32_1 = arith.constant 0 : i32
    return %c0_i32, %c0_i32_0 : i32, i32
  }
  func.func @transform_9(%arg0: i32) -> (i32, i32, i32) {
    %c0_i32 = arith.constant 0 : i32
    %c0_i32_0 = arith.constant 0 : i32
    %c0_i32_1 = arith.constant 0 : i32
    return %arg0, %c0_i32, %c0_i32_0 : i32, i32, i32
  }
}

module attributes {stable_mosaic.version = 11 : i64} {
  func.func @_fused_block_kernel(%arg0: i32, %arg1: memref<1x16x256xbf16, #tpu.memory_space<vmem>>, %arg2: memref<72x256xf32, #tpu.memory_space<vmem>>, %arg3: memref<16x16xbf16, #tpu.memory_space<vmem>>, %arg4: memref<16x1xf32, #tpu.memory_space<vmem>>, %arg5: memref<2x8x72xbf16, #tpu.memory_space<vmem>>, %arg6: memref<2x8x1xf32, #tpu.memory_space<vmem>>, %arg7: memref<32x16xbf16, #tpu.memory_space<vmem>>, %arg8: memref<32x1xf32, #tpu.memory_space<vmem>>, %arg9: memref<32x16xbf16, #tpu.memory_space<vmem>>, %arg10: memref<1x32x256xf32, #tpu.memory_space<vmem>>) attributes {dimension_semantics = [#tpu.dimension_semantics<parallel>], iteration_bounds = array<i64: 2>, scalar_prefetch = 0 : i64, scratch_operands = 0 : i64, tpu.core_type = #tpu.core_type<tc>, window_params = [{transform_indices = @transform_0, window_bounds = array<i64: 1, 16, 256>}, {pipeline_mode = #tpu.pipeline_mode<synchronous>, transform_indices = @transform_1, window_bounds = array<i64: 72, 256>}, {pipeline_mode = #tpu.pipeline_mode<synchronous>, transform_indices = @transform_2, window_bounds = array<i64: 16, 16>}, {pipeline_mode = #tpu.pipeline_mode<synchronous>, transform_indices = @transform_3, window_bounds = array<i64: 16, 1>}, {pipeline_mode = #tpu.pipeline_mode<synchronous>, transform_indices = @transform_4, window_bounds = array<i64: 2, 8, 72>}, {pipeline_mode = #tpu.pipeline_mode<synchronous>, transform_indices = @transform_5, window_bounds = array<i64: 2, 8, 1>}, {pipeline_mode = #tpu.pipeline_mode<synchronous>, transform_indices = @transform_6, window_bounds = array<i64: 32, 16>}, {pipeline_mode = #tpu.pipeline_mode<synchronous>, transform_indices = @transform_7, window_bounds = array<i64: 32, 1>}, {pipeline_mode = #tpu.pipeline_mode<synchronous>, transform_indices = @transform_8, window_bounds = array<i64: 32, 16>}, {transform_indices = @transform_9, window_bounds = array<i64: 1, 32, 256>}]} {
    %c0 = arith.constant 0 : index
    %c0_0 = arith.constant 0 : index
    %c0_1 = arith.constant 0 : index
    %0 = vector.load %arg1[%c0, %c0_0, %c0_1] : memref<1x16x256xbf16, #tpu.memory_space<vmem>>, vector<1x16x256xbf16>
    %1 = vector.shape_cast %0 : vector<1x16x256xbf16> to vector<16x256xbf16>
    %c0_2 = arith.constant 0 : index
    %c0_3 = arith.constant 0 : index
    %2 = vector.load %arg2[%c0_2, %c0_3] : memref<72x256xf32, #tpu.memory_space<vmem>>, vector<72x256xf32>
    %c0_4 = arith.constant 0 : index
    %c0_5 = arith.constant 0 : index
    %3 = vector.load %arg3[%c0_4, %c0_5] : memref<16x16xbf16, #tpu.memory_space<vmem>>, vector<16x16xbf16>
    %cst = arith.constant dense<0.000000e+00> : vector<16x256xf32>
    %4 = tpu.matmul %3, %1, %cst {dimension_numbers = #tpu.dot_dimension_numbers<[1], [0], [0], [1], [0, 0, 1, 1], [], []>} : vector<16x16xbf16>, vector<16x256xbf16>, vector<16x256xf32> -> vector<16x256xf32>
    %c0_6 = arith.constant 0 : index
    %c0_7 = arith.constant 0 : index
    %5 = vector.load %arg4[%c0_6, %c0_7] : memref<16x1xf32, #tpu.memory_space<vmem>>, vector<16x1xf32>
    %6 = vector.broadcast %5 : vector<16x1xf32> to vector<16x256xf32>
    %7 = arith.addf %4, %6 : vector<16x256xf32>
    %cst_8 = arith.constant 0.000000e+00 : f32
    %cst_9 = arith.constant 2.000000e+01 : f32
    %8 = vector.broadcast %cst_8 : f32 to vector<16x256xf32>
    %9 = arith.maximumf %8, %7 : vector<16x256xf32>
    %10 = vector.broadcast %cst_9 : f32 to vector<16x256xf32>
    %11 = arith.minimumf %10, %9 : vector<16x256xf32>
    %c0_10 = arith.constant 0 : index
    %c0_11 = arith.constant 0 : index
    %12 = vector.load %arg9[%c0_10, %c0_11] : memref<32x16xbf16, #tpu.memory_space<vmem>>, vector<32x16xbf16>
    %cst_12 = arith.constant dense<0.000000e+00> : vector<32x256xf32>
    %13 = tpu.matmul %12, %1, %cst_12 {dimension_numbers = #tpu.dot_dimension_numbers<[1], [0], [0], [1], [0, 0, 1, 1], [], []>} : vector<32x16xbf16>, vector<16x256xbf16>, vector<32x256xf32> -> vector<32x256xf32>
    %14 = vector.extract_strided_slice %11 {offsets = [0, 0], sizes = [8, 256], strides = [1, 1]} : vector<16x256xf32> to vector<8x256xf32>
    %c17_i32 = arith.constant 17 : i32
    %15 = tpu.dynamic_rotate %14 by %c17_i32 dim 1 : vector<8x256xf32>, i32 -> vector<8x256xf32>
    %c16_i32 = arith.constant 16 : i32
    %16 = tpu.dynamic_rotate %14 by %c16_i32 dim 1 : vector<8x256xf32>, i32 -> vector<8x256xf32>
    %c15_i32 = arith.constant 15 : i32
    %17 = tpu.dynamic_rotate %14 by %c15_i32 dim 1 : vector<8x256xf32>, i32 -> vector<8x256xf32>
    %c1_i32 = arith.constant 1 : i32
    %18 = tpu.dynamic_rotate %14 by %c1_i32 dim 1 : vector<8x256xf32>, i32 -> vector<8x256xf32>
    %c255_i32 = arith.constant 255 : i32
    %19 = tpu.dynamic_rotate %14 by %c255_i32 dim 1 : vector<8x256xf32>, i32 -> vector<8x256xf32>
    %c241_i32 = arith.constant 241 : i32
    %20 = tpu.dynamic_rotate %14 by %c241_i32 dim 1 : vector<8x256xf32>, i32 -> vector<8x256xf32>
    %c240_i32 = arith.constant 240 : i32
    %21 = tpu.dynamic_rotate %14 by %c240_i32 dim 1 : vector<8x256xf32>, i32 -> vector<8x256xf32>
    %c239_i32 = arith.constant 239 : i32
    %22 = tpu.dynamic_rotate %14 by %c239_i32 dim 1 : vector<8x256xf32>, i32 -> vector<8x256xf32>
    %23 = tpu.concatenate %15, %16, %17, %18, %14, %19, %20, %21, %22 in 0 : vector<8x256xf32>, vector<8x256xf32>, vector<8x256xf32>, vector<8x256xf32>, vector<8x256xf32>, vector<8x256xf32>, vector<8x256xf32>, vector<8x256xf32>, vector<8x256xf32> -> vector<72x256xf32>
    %24 = arith.mulf %23, %2 : vector<72x256xf32>
    %25 = arith.truncf %24 : vector<72x256xf32> to vector<72x256xbf16>
    %c0_13 = arith.constant 0 : index
    %c0_14 = arith.constant 0 : index
    %c0_15 = arith.constant 0 : index
    %26 = vector.load %arg5[%c0_13, %c0_14, %c0_15] : memref<2x8x72xbf16, #tpu.memory_space<vmem>>, vector<1x8x72xbf16>
    %27 = vector.shape_cast %26 : vector<1x8x72xbf16> to vector<8x72xbf16>
    %cst_16 = arith.constant dense<0.000000e+00> : vector<8x256xf32>
    %28 = tpu.matmul %27, %25, %cst_16 {dimension_numbers = #tpu.dot_dimension_numbers<[1], [0], [0], [1], [0, 0, 1, 1], [], []>} : vector<8x72xbf16>, vector<72x256xbf16>, vector<8x256xf32> -> vector<8x256xf32>
    %c0_17 = arith.constant 0 : index
    %c0_18 = arith.constant 0 : index
    %c0_19 = arith.constant 0 : index
    %29 = vector.load %arg6[%c0_17, %c0_18, %c0_19] : memref<2x8x1xf32, #tpu.memory_space<vmem>>, vector<1x8x1xf32>
    %30 = vector.shape_cast %29 : vector<1x8x1xf32> to vector<8x1xf32>
    %31 = vector.broadcast %30 : vector<8x1xf32> to vector<8x256xf32>
    %32 = arith.addf %28, %31 : vector<8x256xf32>
    %cst_20 = arith.constant 0.000000e+00 : f32
    %cst_21 = arith.constant 2.000000e+01 : f32
    %33 = vector.broadcast %cst_20 : f32 to vector<8x256xf32>
    %34 = arith.maximumf %33, %32 : vector<8x256xf32>
    %35 = vector.broadcast %cst_21 : f32 to vector<8x256xf32>
    %36 = arith.minimumf %35, %34 : vector<8x256xf32>
    %37 = vector.extract_strided_slice %11 {offsets = [8, 0], sizes = [8, 256], strides = [1, 1]} : vector<16x256xf32> to vector<8x256xf32>
    %38 = arith.addf %36, %37 : vector<8x256xf32>
    %c17_i32_22 = arith.constant 17 : i32
    %39 = tpu.dynamic_rotate %38 by %c17_i32_22 dim 1 : vector<8x256xf32>, i32 -> vector<8x256xf32>
    %c16_i32_23 = arith.constant 16 : i32
    %40 = tpu.dynamic_rotate %38 by %c16_i32_23 dim 1 : vector<8x256xf32>, i32 -> vector<8x256xf32>
    %c15_i32_24 = arith.constant 15 : i32
    %41 = tpu.dynamic_rotate %38 by %c15_i32_24 dim 1 : vector<8x256xf32>, i32 -> vector<8x256xf32>
    %c1_i32_25 = arith.constant 1 : i32
    %42 = tpu.dynamic_rotate %38 by %c1_i32_25 dim 1 : vector<8x256xf32>, i32 -> vector<8x256xf32>
    %c255_i32_26 = arith.constant 255 : i32
    %43 = tpu.dynamic_rotate %38 by %c255_i32_26 dim 1 : vector<8x256xf32>, i32 -> vector<8x256xf32>
    %c241_i32_27 = arith.constant 241 : i32
    %44 = tpu.dynamic_rotate %38 by %c241_i32_27 dim 1 : vector<8x256xf32>, i32 -> vector<8x256xf32>
    %c240_i32_28 = arith.constant 240 : i32
    %45 = tpu.dynamic_rotate %38 by %c240_i32_28 dim 1 : vector<8x256xf32>, i32 -> vector<8x256xf32>
    %c239_i32_29 = arith.constant 239 : i32
    %46 = tpu.dynamic_rotate %38 by %c239_i32_29 dim 1 : vector<8x256xf32>, i32 -> vector<8x256xf32>
    %47 = tpu.concatenate %39, %40, %41, %42, %38, %43, %44, %45, %46 in 0 : vector<8x256xf32>, vector<8x256xf32>, vector<8x256xf32>, vector<8x256xf32>, vector<8x256xf32>, vector<8x256xf32>, vector<8x256xf32>, vector<8x256xf32>, vector<8x256xf32> -> vector<72x256xf32>
    %48 = arith.mulf %47, %2 : vector<72x256xf32>
    %49 = arith.truncf %48 : vector<72x256xf32> to vector<72x256xbf16>
    %c1 = arith.constant 1 : index
    %c0_30 = arith.constant 0 : index
    %c0_31 = arith.constant 0 : index
    %50 = vector.load %arg5[%c1, %c0_30, %c0_31] : memref<2x8x72xbf16, #tpu.memory_space<vmem>>, vector<1x8x72xbf16>
    %51 = vector.shape_cast %50 : vector<1x8x72xbf16> to vector<8x72xbf16>
    %cst_32 = arith.constant dense<0.000000e+00> : vector<8x256xf32>
    %52 = tpu.matmul %51, %49, %cst_32 {dimension_numbers = #tpu.dot_dimension_numbers<[1], [0], [0], [1], [0, 0, 1, 1], [], []>} : vector<8x72xbf16>, vector<72x256xbf16>, vector<8x256xf32> -> vector<8x256xf32>
    %c1_33 = arith.constant 1 : index
    %c0_34 = arith.constant 0 : index
    %c0_35 = arith.constant 0 : index
    %53 = vector.load %arg6[%c1_33, %c0_34, %c0_35] : memref<2x8x1xf32, #tpu.memory_space<vmem>>, vector<1x8x1xf32>
    %54 = vector.shape_cast %53 : vector<1x8x1xf32> to vector<8x1xf32>
    %55 = vector.broadcast %54 : vector<8x1xf32> to vector<8x256xf32>
    %56 = arith.addf %52, %55 : vector<8x256xf32>
    %cst_36 = arith.constant 0.000000e+00 : f32
    %cst_37 = arith.constant 2.000000e+01 : f32
    %57 = vector.broadcast %cst_36 : f32 to vector<8x256xf32>
    %58 = arith.maximumf %57, %56 : vector<8x256xf32>
    %59 = vector.broadcast %cst_37 : f32 to vector<8x256xf32>
    %60 = arith.minimumf %59, %58 : vector<8x256xf32>
    %61 = tpu.concatenate %36, %60 in 0 : vector<8x256xf32>, vector<8x256xf32> -> vector<16x256xf32>
    %62 = arith.truncf %61 : vector<16x256xf32> to vector<16x256xbf16>
    %c0_38 = arith.constant 0 : index
    %c0_39 = arith.constant 0 : index
    %63 = vector.load %arg7[%c0_38, %c0_39] : memref<32x16xbf16, #tpu.memory_space<vmem>>, vector<32x16xbf16>
    %cst_40 = arith.constant dense<0.000000e+00> : vector<32x256xf32>
    %64 = tpu.matmul %63, %62, %cst_40 {dimension_numbers = #tpu.dot_dimension_numbers<[1], [0], [0], [1], [0, 0, 1, 1], [], []>} : vector<32x16xbf16>, vector<16x256xbf16>, vector<32x256xf32> -> vector<32x256xf32>
    %65 = arith.addf %64, %13 : vector<32x256xf32>
    %c0_41 = arith.constant 0 : index
    %c0_42 = arith.constant 0 : index
    %66 = vector.load %arg8[%c0_41, %c0_42] : memref<32x1xf32, #tpu.memory_space<vmem>>, vector<32x1xf32>
    %67 = vector.broadcast %66 : vector<32x1xf32> to vector<32x256xf32>
    %68 = arith.addf %65, %67 : vector<32x256xf32>
    %cst_43 = arith.constant 0.000000e+00 : f32
    %cst_44 = arith.constant 2.000000e+01 : f32
    %69 = vector.broadcast %cst_43 : f32 to vector<32x256xf32>
    %70 = arith.maximumf %69, %68 : vector<32x256xf32>
    %71 = vector.broadcast %cst_44 : f32 to vector<32x256xf32>
    %72 = arith.minimumf %71, %70 : vector<32x256xf32>
    %c0_45 = arith.constant 0 : index
    %c0_46 = arith.constant 0 : index
    %c0_47 = arith.constant 0 : index
    %73 = vector.load %arg10[%c0_45, %c0_46, %c0_47] : memref<1x32x256xf32, #tpu.memory_space<vmem>>, vector<1x32x256xf32>
    %74 = vector.shape_cast %73 : vector<1x32x256xf32> to vector<32x256xf32>
    %75 = vector.shape_cast %72 : vector<32x256xf32> to vector<1x32x256xf32>
    tpu.vector_store %arg10[%c0_45, %c0_46, %c0_47], %75 {strides = array<i32>} : memref<1x32x256xf32, #tpu.memory_space<vmem>>, vector<1x32x256xf32>,
    return
  }
  func.func @transform_0(%arg0: i32) -> (i32, i32, i32) {
    %c0_i32 = arith.constant 0 : i32
    %c0_i32_0 = arith.constant 0 : i32
    %c0_i32_1 = arith.constant 0 : i32
    return %arg0, %c0_i32, %c0_i32_0 : i32, i32, i32
  }
  func.func @transform_1(%arg0: i32) -> (i32, i32) {
    %c0_i32 = arith.constant 0 : i32
    %c0_i32_0 = arith.constant 0 : i32
    %c0_i32_1 = arith.constant 0 : i32
    return %c0_i32, %c0_i32_0 : i32, i32
  }
  func.func @transform_2(%arg0: i32) -> (i32, i32) {
    %c0_i32 = arith.constant 0 : i32
    %c0_i32_0 = arith.constant 0 : i32
    %c0_i32_1 = arith.constant 0 : i32
    return %c0_i32, %c0_i32_0 : i32, i32
  }
  func.func @transform_3(%arg0: i32) -> (i32, i32) {
    %c0_i32 = arith.constant 0 : i32
    %c0_i32_0 = arith.constant 0 : i32
    %c0_i32_1 = arith.constant 0 : i32
    return %c0_i32, %c0_i32_0 : i32, i32
  }
  func.func @transform_4(%arg0: i32) -> (i32, i32, i32) {
    %c0_i32 = arith.constant 0 : i32
    %c0_i32_0 = arith.constant 0 : i32
    %c0_i32_1 = arith.constant 0 : i32
    %c0_i32_2 = arith.constant 0 : i32
    return %c0_i32, %c0_i32_0, %c0_i32_1 : i32, i32, i32
  }
  func.func @transform_5(%arg0: i32) -> (i32, i32, i32) {
    %c0_i32 = arith.constant 0 : i32
    %c0_i32_0 = arith.constant 0 : i32
    %c0_i32_1 = arith.constant 0 : i32
    %c0_i32_2 = arith.constant 0 : i32
    return %c0_i32, %c0_i32_0, %c0_i32_1 : i32, i32, i32
  }
  func.func @transform_6(%arg0: i32) -> (i32, i32) {
    %c0_i32 = arith.constant 0 : i32
    %c0_i32_0 = arith.constant 0 : i32
    %c0_i32_1 = arith.constant 0 : i32
    return %c0_i32, %c0_i32_0 : i32, i32
  }
  func.func @transform_7(%arg0: i32) -> (i32, i32) {
    %c0_i32 = arith.constant 0 : i32
    %c0_i32_0 = arith.constant 0 : i32
    %c0_i32_1 = arith.constant 0 : i32
    return %c0_i32, %c0_i32_0 : i32, i32
  }
  func.func @transform_8(%arg0: i32) -> (i32, i32) {
    %c0_i32 = arith.constant 0 : i32
    %c0_i32_0 = arith.constant 0 : i32
    %c0_i32_1 = arith.constant 0 : i32
    return %c0_i32, %c0_i32_0 : i32, i32
  }
  func.func @transform_9(%arg0: i32) -> (i32, i32, i32) {
    %c0_i32 = arith.constant 0 : i32
    %c0_i32_0 = arith.constant 0 : i32
    %c0_i32_1 = arith.constant 0 : i32
    return %arg0, %c0_i32, %c0_i32_0 : i32, i32, i32
  }
}

</mosaic_0001>

<bundles_post_ra>
// kernel: tpu_custom_call.1
= control target key start
LH: loop header
LB: loop body
LE: loop exit
PB: predicated region body
PF: predicated region fallthrough
CT: control target
= control target key end

     0   :  { %14 = vsyncpa [#allocation3], 0  ;;  %s1665_s0 = inlined_call_operand.vmem [shape: bf16[2,16,256], index: 0, kind: input, shape index: {}]   ;;  %s1666_s1 = inlined_call_operand.hbm [shape: f32[72,256], index: 1, kind: input, shape index: {}]   ;;  %s1667_s2 = inlined_call_operand.vmem [shape: bf16[16,16], index: 2, kind: input, shape index: {}]   ;;  %s1668_s3 = inlined_call_operand.vmem [shape: f32[16,1], index: 3, kind: input, shape index: {}]   ;;  %s1669_s4 = inlined_call_operand.vmem [shape: bf16[2,8,72], index: 4, kind: input, shape index: {}]   ;;  %s1670_s5 = inlined_call_operand.vmem [shape: f32[2,8,1], index: 5, kind: input, shape index: {}]   ;;  %s1671_s6 = inlined_call_operand.vmem [shape: bf16[32,16], index: 6, kind: input, shape index: {}]   ;;  %s1672_s7 = inlined_call_operand.vmem [shape: f32[32,1], index: 7, kind: input, shape index: {}]   ;;  %s1673_s8 = inlined_call_operand.vmem [shape: bf16[32,16], index: 8, kind: input, shape index: {}]   ;;  %s1674_s9 = inlined_call_operand.hbm [shape: f32[2,32,256], index: 9, kind: output, shape index: {}]  }
   0x1   :  { %15 = vsyncpa [#allocation4], 0 }
   0x2   :  { %17 = vsyncpa [#allocation4 + $0x1], 0  ;;  %s1255_s30 = smov 0   ;;  %s1257_s10 = smov 0  }
   0x3   :  { %s1259_s11 = smov 0   ;;  %s1261_s12 = smov 0  }
   0x4 LB: > { %s1276_s13 = sadd.s32 4294967295, %s1190_s12   ;;  %s962_s14 = sadd.s32 4294967294, %s1190_s12   ;;  %s1190_s12 = sphi %s1261_s12, %s1680_s12   ;;  %s1186_s11 = sphi %s1259_s11, %s1679_s11   ;;  %s1182_s10 = sphi %s1257_s10, %s1678_s10   ;;  %s1178_s30 = sphi %s1255_s30, %s1677_s30  }
   0x5   : > { %s1280_s15 = sadd.s32 1, %s1190_s12   ;;  %s224_s16 = sadd.s32 1, %s1186_s11 }
   0x6   : > { %s221_s17 = ssub.s32 %s1190_s12, %s1280_s15  ;;  %p234_p0 = scmp.ne.s32.totalorder %s1186_s11, %s1182_s10 }
   0x7   : > { %p222_p1 = scmp.eq.s32.totalorder %s221_s17, 0  ;;  %p235_p2 = scmp.eq.s32.totalorder %s1276_s13, 1 }
   0x8   : > { %p240_p3 = scmp.ne.s32.totalorder %s1182_s10, %s1178_s30  ;;  %p241_p4 = scmp.eq.s32.totalorder %s962_s14, 1 }
   0x9   : > { %s1291_s18 = scalar_select %p222_p1, %s1186_s11, %s224_s16  }
   0xa   : > { %p1293_p5 = por %p235_p2, %p234_p0  ;;  %p1297_p6 = por %p241_p4, %p240_p3 }
   0xb   : > { %p963_p7 = scmp.ge.s32.totalorder %s1190_s12, 1  ;;  %p248_p8 = scmp.lt.s32.totalorder %s1190_s12, 3 }
   0xc   : > { %p1043_p9 = scmp.eq.s32.totalorder %s1276_s13, 0  ;;  %s259_s23 = sshll.u32 %s1666_s1, 4  ;;  %s260_s23 = int_to_ptr.hbm [resolvable:$true] %s259_s23 }
   0xd   : > { %p249_p10 = pnand %p963_p7, %p248_p8  ;;  %s1192_s24 = smov [#allocation2]  }
   0xe   : > { %s261_s25 = sshll.u32 %s1192_s24, 4  ;;  %s1193_s26 = smov 256   ;;  %s262_s25 = int_to_ptr.vmem [resolvable:$true] %s261_s25 }
   0xf   : > { %p1035_p11 = pneg %p249_p10  ;;  %s1194_s27 = smov 16  }
  0x10   : > { %306 = sbr.rel (%p249_p10) target bundleno = 939 (0x3ab), region = 56 }
  0x11   : > { %p1036_p12 = pnand %p1043_p9, %p1035_p11 }
  0x13   : > { %1038 = dma.hbm_to_vmem [thread:$0]  (!%p1036_p12), %s260_s23, 2304, %s262_s25, [#allocation3], %s1193_s26, %s1193_s26, %s1194_s27  }
  0x15   : > { %1169 = dma.done.wait (%p1043_p9), [#allocation3], 2304  }
  0x16   : > { %1171 = vsyncadd (%p1043_p9), [#allocation3], 4294964992  ;;  %p343_p13 = scmp.lt.s32.totalorder %s1276_s13, 1  ;;  %v1195_v0 = vmov 0   ;;  %v371_v6 = vld [vmem:[%s1668_s3] sm:$0xff]  ;;  %vm398_vm0 = vcmask 130048   ;;  %v500_v20 = vlaneseq }
  0x17   : > { %1091 = vset.pattern.permute.xlu0 %v1195_v0  ;;  %1092 = vset.pattern.permute.xlu2 %v1195_v0  ;;  %v1023_v8 = vld [vmem:[%s1667_s2] sm:$0xff]  ;;  %s1196_s25 = smov 111   ;;  %s1197_s26 = smov 113   ;;  %v372_v19 = vld [vmem:[%s1668_s3 + $0x8] sm:$0xff]  ;;  %vm593_vm2 = vcmask 1043456   ;;  %v1384_v36 = vld [vmem:[#allocation2 + $0x70] sm:$0xff] }
  0x18   : > { %s344_s28 = scalar_select %p343_p13, %s1276_s13, 1  ;;  %1093 = vset.pattern.permute.xlu1 %v1195_v0  ;;  %375 = vperm.xlu0 %1091, %v371_v6   ;;  %v583_v18 = vld [vmem:[%s1670_s5] sm:$0xff]  ;;  %v1368_v22 = vand.u32 127, %v500_v20  ;;  %v1373_v25 = vld [vmem:[#allocation2 + $0x88] sm:$0xff]  ;;  %v1386_v37 = vld [vmem:[#allocation2 + $0x78] sm:$0xff]  ;;  %vm589_vm10 = vcmask 588800  }
  0x19   : > { %s1198_s27 = smov 112   ;;  %s1201_s14 = smov 1   ;;  %v1371_v24 = vld [vmem:[#allocation2 + $0x80] sm:$0xff]  ;;  %v1391_v40 = vld [vmem:[#allocation2 + $0x68] sm:$0xff]  ;;  %v1408_v55 = vld [vmem:[#allocation2 + $0x50] sm:$0xff] }
  0x1a   : > { %s1020_s29 = sshll.u32 %s344_s28, 4  ;;  %s1199_s28 = smov 15   ;;  %vm551_vm1 = vcmp.lt.s32.totalorder %v1368_v22, 111  ;;  %vm544_vm3 = vcmp.lt.s32.totalorder %v1368_v22, 112  ;;  %vm537_vm4 = vcmp.lt.s32.totalorder %v1368_v22, 113  ;;  %v1389_v39 = vld [vmem:[#allocation2 + $0x60] sm:$0xff] }
  0x1b   : > { %s347_s17 = scalar_lea.vmem %s1665_s0, %s1020_s29  ;;  %s1200_s29 = smov 127   ;;  %vm530_vm5 = vcmp.lt.s32.totalorder %v1368_v22, 127  ;;  %v1406_v53 = vld [vmem:[#allocation2 + $0x40] sm:$0xff]  ;;  %v1410_v56 = vld [vmem:[#allocation2 + $0x58] sm:$0xff]  ;;  %v1412_v57 = vld [vmem:[#allocation2 + $0x48] sm:$0xff]  ;;  %vm523_vm6 = vcmp.lt.s32.totalorder %v1368_v22, 1 }
  0x1c   : > { %v977_v1 = vld [vmem:[%s347_s17] sm:$0xf]  ;;  %v1022_v2 = vld [vmem:[%s347_s17 + $0x4] sm:$0xf0]  ;;  %v1021_v3 = vld [vmem:[%s347_s17 + $0x4] sm:$0xf] }
  0x1d   : > { %v978_v4 = vor.u32 %v1022_v2, %v977_v1  ;;  %v979_v5 = vld [vmem:[%s347_s17 + $0x8] sm:$0xf0]  ;;  %s1202_s16 = smov 16   ;;  %s1203_s17 = smov 17   ;;  %vm516_vm7 = vcmp.lt.s32.totalorder %v1368_v22, 15  ;;  %vm502_vm8 = vcmp.lt.s32.totalorder %v1368_v22, 17 }
  0x1e   : > { %v982_v7 = vor.u32 %v1021_v3, %v979_v5  ;;  %v1425_v3 = vld [vmem:[#allocation2 + $0x30] sm:$0xff]  ;;  %vm509_vm9 = vcmp.lt.s32.totalorder %v1368_v22, 16  ;;  %s340_s21 = sand.u32 1, %s1182_s10  }
  0x1f   : > { %409 = vmatpush.bf16.msra.mxu2 %v978_v4  ;;  %s968_s22 = sshll.u32 %s340_s21, 6  ;;  %s873_s23 = scalar_lea.sflag [#allocation4], %s340_s21 }
  0x20   : > { %423 = vmatpush.bf16.msra.mxu3 %v982_v7 }
  0x22   : > { %983 = vmatmul.msk.bf16.vlgmr.msra.gmra.mxu2 %vm398_vm0, %v1023_v8 }
  0x23   : > { %465 = vmatpush.bf16.msrb.mxu2 %v978_v4  ;;  %984 = vmatmul.msk.bf16.vlgmr.msra.gmra.mxu3 %vm398_vm0, %v1023_v8  ;;  %v1427_v4 = vld [vmem:[#allocation2 + $0x38] sm:$0xff]  ;;  %v1432_v8 = vld [vmem:[#allocation2 + $0x28] sm:$0xff] }
  0x24   : > { %484 = vmatpush.bf16.msrb.mxu3 %v982_v7  ;;  %v1430_v7 = vld [vmem:[#allocation2 + $0x20] sm:$0xff] }
  0x8a   : > { %v376_v9 = vpop.permute.xlu0 %375 }
  0xa5   : > { %v411_v10 = vpop.f32.mrf.mxu2 }
  0xa6   : > { %v412_v11 = vadd.f32 %v411_v10, %v376_v9  ;;  %v425_v12 = vpop.f32.mrf.mxu3 }
  0xa7   : > { %v426_v13 = vadd.f32 %v425_v12, %v376_v9 }
  0xa8   : > { %v430_v14 = vmax.f32 %v412_v11, 0.0 }
  0xa9   : > { %v431_v15 = vmax.f32 %v426_v13, 0.0 }
  0xaa   : > { %v1326_v16 = vmin.f32 %v430_v14, 20.0 }
  0xab   : > { %v1328_v17 = vmin.f32 %v431_v15, 20.0 }
  0xac   : > { %547 = vrot.lane.b32.xlu0 %v1326_v16, %s1196_s25  ;;  %v562_v63 = vmul.f32 %v1326_v16, %v1406_v53 }
  0xad   : > { %535 = vrot.lane.b32.xlu2 %v1328_v17, %s1197_s26  ;;  %549 = vrot.lane.b32.xlu1 %v1328_v17, %s1196_s25  ;;  %v563_v0 = vmul.f32 %v1328_v17, %v1412_v57 }
  0xb4   : > { %542 = vrot.lane.b32.xlu0 %v1328_v17, %s1198_s27 }
  0xb5   : > { %540 = vrot.lane.b32.xlu2 %v1326_v16, %s1198_s27  ;;  %533 = vrot.lane.b32.xlu1 %v1326_v16, %s1197_s26 }
  0xbc   : > { %512 = vrot.lane.b32.xlu0 %v1326_v16, %s1199_s28 }
  0xbd   : > { %528 = vrot.lane.b32.xlu2 %v1328_v17, %s1200_s29  ;;  %526 = vrot.lane.b32.xlu1 %v1326_v16, %s1200_s29 }
  0xc4   : > { %521 = vrot.lane.b32.xlu0 %v1328_v17, %s1201_s14 }
  0xc5   : > { %519 = vrot.lane.b32.xlu2 %v1326_v16, %s1201_s14  ;;  %514 = vrot.lane.b32.xlu1 %v1328_v17, %s1199_s28 }
  0xcc   : > { %505 = vrot.lane.b32.xlu0 %v1326_v16, %s1202_s16 }
  0xcd   : > { %498 = vrot.lane.b32.xlu2 %v1328_v17, %s1203_s17  ;;  %496 = vrot.lane.b32.xlu1 %v1326_v16, %s1203_s17 }
  0xd4   : > { %586 = vperm.xlu0 %1091, %v583_v18  }
  0xd5   : > { %380 = vperm.xlu2 %1092, %v372_v19   ;;  %507 = vrot.lane.b32.xlu1 %v1328_v17, %s1202_s16 }
 0x107   : > { %v536_v21 = vpop.permute.xlu2 %535 }
 0x10f   : > { %v541_v31 = vpop.permute.xlu2 %540 }
 0x117   : > { %v529_v52 = vpop.permute.xlu2 %528 }
 0x11e   : > { %v548_v23 = vpop.permute.xlu0 %547 }
 0x11f   : > { %v550_v26 = vpop.permute.xlu1 %549  ;;  %v520_v5 = vpop.permute.xlu2 %519 }
 0x120   : > { %v552_v27 = vsel %vm551_vm1, %v548_v23, %v550_v26  ;;  %v553_v28 = vsel %vm551_vm1, %v550_v26, %v548_v23  ;;  %v1447_v23 = vld [vmem:[#allocation2] sm:$0xff]  ;;  %v1450_v26 = vld [vmem:[#allocation2 + $0x8] sm:$0xff] }
 0x121   : > { %v570_v29 = vmul.f32 %v552_v27, %v1371_v24  ;;  %v571_v30 = vmul.f32 %v553_v28, %v1373_v25 }
 0x123   : > { %v580_v32 = vpack.c.bf16 %v570_v29, %v570_v29  ;;  %v581_v33 = vpack.c.bf16 %v571_v30, %v571_v30  ;;  %v1456_v29 = vld [vmem:[#allocation2 + $0x10] sm:$0xff]  ;;  %v1458_v30 = vld [vmem:[#allocation2 + $0x18] sm:$0xff] }
 0x125   : > { %v595_v34 = vsel %vm593_vm2, %v580_v32, 0  ;;  %v598_v35 = vsel %vm593_vm2, %v581_v33, 0 }
 0x126   : > { %603 = vmatpush.bf16.msra.mxu0 %v595_v34  ;;  %616 = vmatpush.bf16.msra.mxu1 %v598_v35  ;;  %v543_v38 = vpop.permute.xlu0 %542 }
 0x127   : > { %v545_v41 = vsel %vm544_vm3, %v541_v31, %v543_v38  ;;  %v546_v42 = vsel %vm544_vm3, %v543_v38, %v541_v31  ;;  %v534_v43 = vpop.permute.xlu1 %533 }
 0x128   : > { %v568_v44 = vmul.f32 %v545_v41, %v1384_v36  ;;  %v569_v45 = vmul.f32 %v546_v42, %v1386_v37  ;;  %v538_v46 = vsel %vm537_vm4, %v534_v43, %v536_v21  ;;  %v539_v47 = vsel %vm537_vm4, %v536_v21, %v534_v43  ;;  %v499_v21 = vpop.permute.xlu2 %498 }
 0x129   : > { %v566_v48 = vmul.f32 %v538_v46, %v1389_v39  ;;  %v567_v49 = vmul.f32 %v539_v47, %v1391_v40  ;;  %v413_v47 = vpop.f32.mrf.mxu2 }
 0x12b   : > { %v578_v50 = vpack.c.bf16 %v568_v44, %v566_v48  ;;  %v579_v51 = vpack.c.bf16 %v569_v45, %v567_v49  ;;  %v582_v45 = vld [vmem:[%s1669_s4] sm:$0xf]  ;;  %v427_v48 = vpop.f32.mrf.mxu3 }
 0x12d   : > { %604 = vmatpush.bf16.msra.mxu0 %v578_v50  ;;  %617 = vmatpush.bf16.msra.mxu1 %v579_v51 }
 0x12e   : > { %v513_v54 = vpop.permute.xlu0 %512 }
 0x12f   : > { %v527_v58 = vpop.permute.xlu1 %526 }
 0x130   : > { %v531_v59 = vsel %vm530_vm5, %v527_v58, %v529_v52  ;;  %v532_v60 = vsel %vm530_vm5, %v529_v52, %v527_v58  ;;  %v381_v46 = vpop.permute.xlu2 %380 }
 0x131   : > { %v564_v61 = vmul.f32 %v531_v59, %v1408_v55  ;;  %v565_v62 = vmul.f32 %v532_v60, %v1410_v56  ;;  %v414_v49 = vadd.f32 %v413_v47, %v381_v46  ;;  %v428_v50 = vadd.f32 %v427_v48, %v381_v46 }
 0x133   : > { %v576_v1 = vpack.c.bf16 %v564_v61, %v562_v63  ;;  %v577_v2 = vpack.c.bf16 %v565_v62, %v563_v0  ;;  %v432_v58 = vmax.f32 %v414_v49, 0.0  ;;  %v433_v59 = vmax.f32 %v428_v50, 0.0 }
 0x135   : > { %605 = vmatpush.bf16.msra.mxu0 %v576_v1  ;;  %618 = vmatpush.bf16.msra.mxu1 %v577_v2  ;;  %v436_v0 = vmin.f32 %v432_v58, 20.0  ;;  %v437_v1 = vmin.f32 %v433_v59, 20.0 }
 0x136   : > { %v522_v6 = vpop.permute.xlu0 %521 }
 0x137   : > { %v524_v9 = vsel %vm523_vm6, %v520_v5, %v522_v6  ;;  %v525_v10 = vsel %vm523_vm6, %v522_v6, %v520_v5  ;;  %v515_v11 = vpop.permute.xlu1 %514 }
 0x138   : > { %v560_v12 = vmul.f32 %v525_v10, %v1425_v3  ;;  %v561_v13 = vmul.f32 %v524_v9, %v1427_v4  ;;  %v517_v14 = vsel %vm516_vm7, %v513_v54, %v515_v11  ;;  %v518_v15 = vsel %vm516_vm7, %v515_v11, %v513_v54 }
 0x139   : > { %v558_v16 = vmul.f32 %v518_v15, %v1430_v7  ;;  %v559_v17 = vmul.f32 %v517_v14, %v1432_v8  ;;  %v819_v14 = vld [vmem:[%s1672_s7 + $0x18] sm:$0xff]  ;;  %v818_v15 = vld [vmem:[%s1672_s7 + $0x10] sm:$0xff] }
 0x13b   : > { %v574_v18 = vpack.c.bf16 %v560_v12, %v558_v16  ;;  %v575_v19 = vpack.c.bf16 %v561_v13, %v559_v17  ;;  %v816_v12 = vld [vmem:[%s1672_s7] sm:$0xff]  ;;  %v1000_v13 = vld [vmem:[%s1670_s5 + $0x8] sm:$0xff] }
 0x13c   : > { %v1024_v16 = vld [vmem:[%s1673_s8] sm:$0xff]  ;;  %v1025_v17 = vld [vmem:[%s1673_s8 + $0x8] sm:$0xff] }
 0x13d   : > { %606 = vmatpush.bf16.msra.mxu0 %v574_v18  ;;  %619 = vmatpush.bf16.msra.mxu1 %v575_v19 }
 0x13e   : > { %v506_v31 = vpop.permute.xlu0 %505  ;;  %993 = vmatmul.msk.bf16.vlgmr.msrb.gmra.mxu2 %vm398_vm0, %v1024_v16  ;;  %995 = vmatmul.msk.bf16.vlgmr.msrb.gmra.mxu3 %vm398_vm0, %v1024_v16 }
 0x13f   : > { %v497_v20 = vpop.permute.xlu1 %496 }
 0x140   : > { %v503_v27 = vsel %vm502_vm8, %v497_v20, %v499_v21  ;;  %v504_v28 = vsel %vm502_vm8, %v499_v21, %v497_v20 }
 0x141   : > { %v554_v35 = vmul.f32 %v504_v28, %v1447_v23  ;;  %v555_v38 = vmul.f32 %v503_v27, %v1450_v26 }
 0x146   : > { %v587_v51 = vpop.permute.xlu0 %586 }
 0x147   : > { %v508_v32 = vpop.permute.xlu1 %507 }
 0x148   : > { %v510_v33 = vsel %vm509_vm9, %v506_v31, %v508_v32  ;;  %v511_v34 = vsel %vm509_vm9, %v508_v32, %v506_v31 }
 0x149   : > { %v556_v41 = vmul.f32 %v511_v34, %v1456_v29  ;;  %v557_v42 = vmul.f32 %v510_v33, %v1458_v30 }
 0x14b   : > { %v572_v43 = vpack.c.bf16 %v556_v41, %v554_v35  ;;  %v573_v44 = vpack.c.bf16 %v557_v42, %v555_v38 }
 0x14d   : > { %607 = vmatpush.bf16.msra.mxu0 %v572_v43  ;;  %620 = vmatpush.bf16.msra.mxu1 %v573_v44 }
 0x14e   : > { %994 = vmatmul.msk.bf16.gmra.mxu2 %vm398_vm0, %v1025_v17  ;;  %996 = vmatmul.msk.bf16.gmra.mxu3 %vm398_vm0, %v1025_v17 }
 0x150   : > { %997 = vmatmul.msk.bf16.vlgmr.msra.gmra.mxu0 %vm589_vm10, %v582_v45  ;;  %998 = vmatmul.msk.bf16.vlgmr.msra.gmra.mxu1 %vm589_vm10, %v582_v45 }
 0x1c1   : > { %v467_v22 = vpop.f32.mrf.mxu2 }
 0x1cd   : > { %v609_v52 = vpop.f32.mrf.mxu0  ;;  %v622_v54 = vpop.f32.mrf.mxu1 }
 0x1ce   : > { %v610_v60 = vadd.f32 %v609_v52, %v587_v51  ;;  %v623_v61 = vadd.f32 %v622_v54, %v587_v51 }
 0x1d0   : > { %v626_v62 = vmax.f32 %v610_v60, 0.0  ;;  %v627_v63 = vmax.f32 %v623_v61, 0.0 }
 0x1d2   : > { %v1473_v2 = vmin.f32 %v626_v62, 20.0  ;;  %v1475_v5 = vmin.f32 %v627_v63, 20.0 }
 0x1d4   : > { %v1478_v6 = vadd.f32 %v1473_v2, %v436_v0  ;;  %v1481_v9 = vadd.f32 %v1475_v5, %v437_v1 }
 0x1d5   : > { %v611_v10 = vpop.f32.mrf.mxu0  ;;  %v624_v11 = vpop.f32.mrf.mxu1 }
 0x1d6   : > { %662 = vrot.lane.b32.xlu0 %v1478_v6, %s1197_s26  ;;  %674 = vrot.lane.b32.xlu1 %v1478_v6, %s1196_s25 }
 0x1d7   : > { %676 = vrot.lane.b32.xlu2 %v1481_v9, %s1196_s25  ;;  %s1618_s25 = scalar_lea.vmem [#allocation5], %s968_s22 }
 0x1de   : > { %670 = vrot.lane.b32.xlu0 %v1481_v9, %s1198_s27  ;;  %664 = vrot.lane.b32.xlu1 %v1481_v9, %s1197_s26  ;;  %s1028_s26 = sshll.u32 %s1276_s13, 6  ;;  %s885_s13 = sshll.u32 %s1618_s25, 4  ;;  %s886_s13 = int_to_ptr.vmem [resolvable:$true] %s885_s13 }
 0x1df   : > { %668 = vrot.lane.b32.xlu2 %v1478_v6, %s1198_s27  ;;  %s1144_s27 = scalar_lea.hbm %s1674_s9, 128 }
 0x1e6   : > { %644 = vrot.lane.b32.xlu0 %v1478_v6, %s1199_s28  ;;  %656 = vrot.lane.b32.xlu1 %v1478_v6, %s1200_s29 }
 0x1e7   : > { %658 = vrot.lane.b32.xlu2 %v1481_v9, %s1200_s29 }
 0x1ee   : > { %652 = vrot.lane.b32.xlu0 %v1481_v9, %s1201_s14  ;;  %646 = vrot.lane.b32.xlu1 %v1481_v9, %s1199_s28  ;;  %s884_s28 = scalar_lea.hbm %s1674_s9, %s1028_s26 }
 0x1ef   : > { %650 = vrot.lane.b32.xlu2 %v1478_v6, %s1201_s14  ;;  %s887_s14 = sshll.u32 %s884_s28, 4  ;;  %s888_s14 = int_to_ptr.hbm [resolvable:$true] %s887_s14 }
 0x1f0   : > { %s1138_s24 = sshra.s32 %s888_s14, 4  ;;  %s1139_s24 = int_to_ptr.hbm [resolvable:$true] %s1138_s24 }
 0x1f1   : > { %p1145_p3 = scmp.lt.s32.totalorder %s1139_s24, %s1674_s9 }
 0x1f6   : > { %638 = vrot.lane.b32.xlu0 %v1478_v6, %s1202_s16  ;;  %632 = vrot.lane.b32.xlu1 %v1478_v6, %s1203_s17 }
 0x1f7   : > { %634 = vrot.lane.b32.xlu2 %v1481_v9, %s1203_s17  ;;  %s1140_s17 = scalar_lea.hbm %s1139_s24, 64 }
 0x1f8   : > { %p1141_p0 = scmp.ne.s32.totalorder %s1139_s24, %s1140_s17  ;;  %p1146_p4 = scmp.lt.s32.totalorder %s1144_s27, %s1140_s17 }
 0x1fa   : > { %p1142_p1 = pnand %p1141_p0, %p1293_p5  ;;  %p1147_p7 = por %p1146_p4, %p1145_p3 }
 0x1fc   : > { %p1143_p2 = pneg %p1142_p1 }
 0x1fe   : > { %822 = vperm.xlu0 %1091, %v816_v12   ;;  %640 = vrot.lane.b32.xlu1 %v1481_v9, %s1202_s16  ;;  %p1148_p8 = pnand %p1147_p7, %p1143_p2 }
 0x1ff   : > { %714 = vperm.xlu2 %1092, %v1000_v13  }
 0x206   : > { %837 = vperm.xlu0 %1091, %v819_v14  }
 0x207   : > { %832 = vperm.xlu2 %1092, %v818_v15  }
 0x231   : > { %v677_v18 = vpop.permute.xlu2 %676 }
 0x239   : > { %v669_v32 = vpop.permute.xlu2 %668 }
 0x241   : > { %v659_v51 = vpop.permute.xlu2 %658 }
 0x248   : > { %v663_v19 = vpop.permute.xlu0 %662  ;;  %v675_v20 = vpop.permute.xlu1 %674 }
 0x249   : > { %v678_v21 = vsel %vm551_vm1, %v675_v20, %v677_v18  ;;  %v679_v27 = vsel %vm551_vm1, %v677_v18, %v675_v20  ;;  %v651_v62 = vpop.permute.xlu2 %650 }
 0x24a   : > { %v696_v28 = vmul.f32 %v678_v21, %v1371_v24  ;;  %v697_v31 = vmul.f32 %v679_v27, %v1373_v25 }
 0x24c   : > { %v706_v33 = vpack.c.bf16 %v696_v28, %v696_v28  ;;  %v707_v34 = vpack.c.bf16 %v697_v31, %v697_v31  ;;  %v999_v28 = vld [vmem:[%s1669_s4 + $0x4] sm:$0xf]  ;;  %v469_v31 = vpop.f32.mrf.mxu2 }
 0x24e   : > { %v721_v35 = vsel %vm593_vm2, %v706_v33, 0  ;;  %v724_v38 = vsel %vm593_vm2, %v707_v34, 0  ;;  %v817_v34 = vld [vmem:[%s1672_s7 + $0x8] sm:$0xff] }
 0x24f   : > { %729 = vmatpush.bf16.msra.mxu2 %v721_v35  ;;  %742 = vmatpush.bf16.msra.mxu3 %v724_v38 }
 0x250   : > { %v671_v41 = vpop.permute.xlu0 %670  ;;  %v665_v42 = vpop.permute.xlu1 %664  ;;  %827 = vperm.xlu1 %1093, %v817_v34  }
 0x251   : > { %v672_v43 = vsel %vm544_vm3, %v669_v32, %v671_v41  ;;  %v673_v44 = vsel %vm544_vm3, %v671_v41, %v669_v32  ;;  %v666_v24 = vsel %vm537_vm4, %v663_v19, %v665_v42  ;;  %v667_v25 = vsel %vm537_vm4, %v665_v42, %v663_v19  ;;  %v635_v14 = vpop.permute.xlu2 %634 }
 0x252   : > { %v694_v45 = vmul.f32 %v672_v43, %v1384_v36  ;;  %v695_v46 = vmul.f32 %v673_v44, %v1386_v37  ;;  %v692_v47 = vmul.f32 %v666_v24, %v1389_v39  ;;  %v693_v48 = vmul.f32 %v667_v25, %v1391_v40 }
 0x253   : > { %v688_v39 = vmul.f32 %v1478_v6, %v1406_v53  ;;  %v689_v40 = vmul.f32 %v1481_v9, %v1412_v57 }
 0x254   : > { %v704_v49 = vpack.c.bf16 %v694_v45, %v692_v47  ;;  %v705_v50 = vpack.c.bf16 %v695_v46, %v693_v48  ;;  %v472_v32 = vpop.f32.mrf.mxu2 }
 0x256   : > { %730 = vmatpush.bf16.msra.mxu2 %v704_v49  ;;  %743 = vmatpush.bf16.msra.mxu3 %v705_v50  ;;  %v1026_v50 = vld [vmem:[%s1671_s6] sm:$0xff] }
 0x258   : > { %v645_v52 = vpop.permute.xlu0 %644  ;;  %v657_v54 = vpop.permute.xlu1 %656 }
 0x259   : > { %v660_v58 = vsel %vm530_vm5, %v657_v54, %v659_v51  ;;  %v661_v59 = vsel %vm530_vm5, %v659_v51, %v657_v54  ;;  %v715_v35 = vpop.permute.xlu2 %714  ;;  %v1027_v51 = vld [vmem:[%s1671_s6 + $0x8] sm:$0xff] }
 0x25a   : > { %v690_v36 = vmul.f32 %v660_v58, %v1408_v55  ;;  %v691_v37 = vmul.f32 %v661_v59, %v1410_v56 }
 0x25c   : > { %v702_v60 = vpack.c.bf16 %v690_v36, %v688_v39  ;;  %v703_v61 = vpack.c.bf16 %v691_v37, %v689_v40  ;;  %v1596_v33 = vpop.f32.mrf.mxu2 }
 0x25e   : > { %731 = vmatpush.bf16.msra.mxu2 %v702_v60  ;;  %744 = vmatpush.bf16.msra.mxu3 %v703_v61 }
 0x260   : > { %v653_v63 = vpop.permute.xlu0 %652  ;;  %v647_v0 = vpop.permute.xlu1 %646 }
 0x261   : > { %v654_v1 = vsel %vm523_vm6, %v651_v62, %v653_v63  ;;  %v655_v55 = vsel %vm523_vm6, %v653_v63, %v651_v62  ;;  %v648_v56 = vsel %vm516_vm7, %v645_v52, %v647_v0  ;;  %v649_v53 = vsel %vm516_vm7, %v647_v0, %v645_v52 }
 0x262   : > { %v686_v57 = vmul.f32 %v655_v55, %v1425_v3  ;;  %v687_v6 = vmul.f32 %v654_v1, %v1427_v4  ;;  %v684_v9 = vmul.f32 %v649_v53, %v1430_v7  ;;  %v685_v10 = vmul.f32 %v648_v56, %v1432_v8 }
 0x264   : > { %v700_v11 = vpack.c.bf16 %v686_v57, %v684_v9  ;;  %v701_v12 = vpack.c.bf16 %v687_v6, %v685_v10 }
 0x266   : > { %732 = vmatpush.bf16.msra.mxu2 %v700_v11  ;;  %745 = vmatpush.bf16.msra.mxu3 %v701_v12 }
 0x268   : > { %v633_v13 = vpop.permute.xlu1 %632  ;;  %v639_v17 = vpop.permute.xlu0 %638 }
 0x269   : > { %v636_v15 = vsel %vm502_vm8, %v633_v13, %v635_v14  ;;  %v637_v16 = vsel %vm502_vm8, %v635_v14, %v633_v13  ;;  %v833_v14 = vpop.permute.xlu2 %832 }
 0x26a   : > { %v680_v8 = vmul.f32 %v637_v16, %v1447_v23  ;;  %v681_v18 = vmul.f32 %v636_v15, %v1450_v26  ;;  %v486_v23 = vpop.f32.mrf.mxu3 }
 0x270   : > { %v641_v3 = vpop.permute.xlu1 %640  ;;  %v823_v58 = vpop.permute.xlu0 %822 }
 0x271   : > { %v642_v4 = vsel %vm509_vm9, %v639_v17, %v641_v3  ;;  %v643_v7 = vsel %vm509_vm9, %v641_v3, %v639_v17 }
 0x272   : > { %v682_v19 = vmul.f32 %v643_v7, %v1456_v29  ;;  %v683_v20 = vmul.f32 %v642_v4, %v1458_v30  ;;  %v488_v26 = vpop.f32.mrf.mxu3 }
 0x274   : > { %v698_v21 = vpack.c.bf16 %v682_v19, %v680_v8  ;;  %v699_v27 = vpack.c.bf16 %v683_v20, %v681_v18 }
 0x276   : > { %733 = vmatpush.bf16.msra.mxu2 %v698_v21  ;;  %746 = vmatpush.bf16.msra.mxu3 %v699_v27 }
 0x278   : > { %v838_v21 = vpop.permute.xlu0 %837 }
 0x279   : > { %1001 = vmatmul.msk.bf16.vlgmr.msra.gmra.mxu2 %vm589_vm10, %v999_v28  ;;  %1002 = vmatmul.msk.bf16.vlgmr.msra.gmra.mxu3 %vm589_vm10, %v999_v28 }
 0x27a   : > { %v491_v29 = vpop.f32.mrf.mxu3 }
 0x282   : > { %v1598_v30 = vpop.f32.mrf.mxu3 }
 0x2c2   : > { %v828_v61 = vpop.permute.xlu1 %827 }
 0x2fc   : > { %v735_v38 = vpop.f32.mrf.mxu2  ;;  %v748_v41 = vpop.f32.mrf.mxu3 }
 0x2fd   : > { %v736_v42 = vadd.f32 %v735_v38, %v715_v35  ;;  %v749_v43 = vadd.f32 %v748_v41, %v715_v35 }
 0x2ff   : > { %v752_v44 = vmax.f32 %v736_v42, 0.0  ;;  %v753_v24 = vmax.f32 %v749_v43, 0.0 }
 0x301   : > { %v754_v25 = vmin.f32 %v752_v44, 20.0  ;;  %v755_v45 = vmin.f32 %v753_v24, 20.0 }
 0x303   : > { %v756_v46 = vpack.c.bf16 %v754_v25, %v1473_v2  ;;  %v757_v47 = vpack.c.bf16 %v755_v45, %v1475_v5 }
 0x304   : > { %v737_v48 = vpop.f32.mrf.mxu2  ;;  %v750_v49 = vpop.f32.mrf.mxu3 }
 0x305   : > { %785 = vmatpush.bf16.msrb.mxu0 %v756_v46  ;;  %804 = vmatpush.bf16.msrb.mxu1 %v757_v47 }
 0x308   : > { %1011 = vmatmul.msk.bf16.vlgmr.msrb.gmra.mxu0 %vm398_vm0, %v1026_v50  ;;  %1013 = vmatmul.msk.bf16.vlgmr.msrb.gmra.mxu1 %vm398_vm0, %v1026_v50 }
 0x318   : > { %1012 = vmatmul.msk.bf16.gmra.mxu0 %vm398_vm0, %v1027_v51  ;;  %1014 = vmatmul.msk.bf16.gmra.mxu1 %vm398_vm0, %v1027_v51 }
 0x385   : > { %v787_v2 = vpop.f32.mrf.mxu0  ;;  %v806_v5 = vpop.f32.mrf.mxu1 }
 0x386   : > { %v788_v52 = vadd.f32 %v787_v2, %v467_v22  ;;  %v807_v54 = vadd.f32 %v806_v5, %v486_v23 }
 0x388   : > { %v840_v59 = vadd.f32 %v823_v58, %v788_v52  ;;  %v841_v36 = vadd.f32 %v823_v58, %v807_v54 }
 0x38a   : > { %v848_v37 = vmax.f32 %v840_v59, 0.0  ;;  %v849_v39 = vmax.f32 %v841_v36, 0.0 }
 0x38c   : > { %v856_v40 = vmin.f32 %v848_v37, 20.0  ;;  %v857_v60 = vmin.f32 %v849_v39, 20.0 }
 0x38d   : > { %v789_v62 = vpop.f32.mrf.mxu0  ;;  %v808_v63 = vpop.f32.mrf.mxu1 }
 0x38e   : > { %864 = vst [vmem:[%s1618_s25] sm:$0xff] %v856_v40  ;;  %v790_v0 = vadd.f32 %v789_v62, %v469_v31  ;;  %v809_v1 = vadd.f32 %v808_v63, %v488_v26 }
 0x38f   : > { %865 = vst [vmem:[%s1618_s25 + $0x8] sm:$0xff] %v857_v60 }
 0x390   : > { %v842_v55 = vadd.f32 %v828_v61, %v790_v0  ;;  %v843_v56 = vadd.f32 %v828_v61, %v809_v1 }
 0x392   : > { %v850_v53 = vmax.f32 %v842_v55, 0.0  ;;  %v851_v57 = vmax.f32 %v843_v56, 0.0 }
 0x394   : > { %v858_v6 = vmin.f32 %v850_v53, 20.0  ;;  %v859_v9 = vmin.f32 %v851_v57, 20.0 }
 0x395   : > { %v792_v10 = vpop.f32.mrf.mxu0  ;;  %v811_v11 = vpop.f32.mrf.mxu1 }
 0x396   : > { %866 = vst [vmem:[%s1618_s25 + $0x10] sm:$0xff] %v858_v6  ;;  %v793_v12 = vadd.f32 %v792_v10, %v472_v32  ;;  %v812_v13 = vadd.f32 %v811_v11, %v491_v29 }
 0x397   : > { %867 = vst [vmem:[%s1618_s25 + $0x18] sm:$0xff] %v859_v9 }
 0x398   : > { %v844_v15 = vadd.f32 %v833_v14, %v793_v12  ;;  %v845_v16 = vadd.f32 %v833_v14, %v812_v13 }
 0x39a   : > { %v852_v17 = vmax.f32 %v844_v15, 0.0  ;;  %v853_v3 = vmax.f32 %v845_v16, 0.0 }
 0x39c   : > { %v860_v4 = vmin.f32 %v852_v17, 20.0  ;;  %v861_v7 = vmin.f32 %v853_v3, 20.0 }
 0x39d   : > { %v794_v8 = vpop.f32.mrf.mxu0  ;;  %v813_v18 = vpop.f32.mrf.mxu1 }
 0x39e   : > { %868 = vst [vmem:[%s1618_s25 + $0x20] sm:$0xff] %v860_v4  ;;  %v795_v19 = vadd.f32 %v794_v8, %v1596_v33  ;;  %v814_v20 = vadd.f32 %v813_v18, %v1598_v30 }
 0x39f   : > { %869 = vst [vmem:[%s1618_s25 + $0x28] sm:$0xff] %v861_v7 }
 0x3a0   : > { %v846_v27 = vadd.f32 %v838_v21, %v795_v19  ;;  %v847_v28 = vadd.f32 %v838_v21, %v814_v20 }
 0x3a2   : > { %v854_v22 = vmax.f32 %v846_v27, 0.0  ;;  %v855_v23 = vmax.f32 %v847_v28, 0.0 }
 0x3a4   : > { %v862_v31 = vmin.f32 %v854_v22, 20.0  ;;  %v863_v26 = vmin.f32 %v855_v23, 20.0 }
 0x3a6   : > { %870 = vst [vmem:[%s1618_s25 + $0x30] sm:$0xff] %v862_v31 }
 0x3a7   : > { %871 = vst [vmem:[%s1618_s25 + $0x38] sm:$0xff] %v863_v26 }
 0x3a8   : > { %1151 = shalt.err (!%p1148_p8)
}
 0x3a9   : > { %s1204_s21 = smov 256  }
 0x3aa   : > { %1033 = dma.vmem_to_hbm [thread:$0]  (%p1293_p5), %s886_s13, 1024, %s888_s14, %s873_s23, %s1204_s21, %s1204_s21, %s1202_s16  }
 0x3ab PF: > { %p1045_p9 = scmp.ge.s32.totalorder %s1190_s12, 2  ;;  %s902_s25 = sand.u32 1, %s1178_s30  }
 0x3ac   : > { %s903_s22 = scalar_lea.sflag [#allocation4], %s902_s25 }
 0x3ad   : > { %p1040_p10 = pnand %p1045_p9, %p1297_p6 }
 0x3af   : > { %p1041_p11 = pneg %p1040_p10 }
 0x3b1   : > { %1173 = dma.done.wait (%p1041_p11), %s903_s22, 1024  }
 0x3b2   : > { %1175 = vsyncadd (%p1041_p11), %s903_s22, 4294966272  ;;  %p20_p12 = scmp.ge.s32.totalorder %s1280_s15, 4   ;;  %s1677_s30 = smov %s1182_s10 }
 0x3b3   : > { %s1678_s10 = smov %s1186_s11  ;;  %s1679_s11 = smov %s1291_s18 }
 0x3b4   : > { %s1680_s12 = smov %s1280_s15  ;;  %22 = sbr.rel (!%p20_p12) target bundleno = 4 (0x4), region = 98 }
 0x3b9   :  { %909 = vsyncpa [#allocation3], 1 }
 0x3ba   :  { %911 = vsyncpa [#allocation3 + $0x1], 1 }
 0x3bb   :  { %912 = vsyncpa [#allocation4], 1 }
 0x3bc   :  { %914 = vsyncpa [#allocation4 + $0x1], 1 }

// kernel: tpu_custom_call.1
= control target key start
LH: loop header
LB: loop body
LE: loop exit
PB: predicated region body
PF: predicated region fallthrough
CT: control target
= control target key end

     0   :  { %14 = vsyncpa [#allocation3], 0  ;;  %s1665_s0 = inlined_call_operand.vmem [shape: bf16[2,16,256], index: 0, kind: input, shape index: {}]   ;;  %s1666_s1 = inlined_call_operand.hbm [shape: f32[72,256], index: 1, kind: input, shape index: {}]   ;;  %s1667_s2 = inlined_call_operand.vmem [shape: bf16[16,16], index: 2, kind: input, shape index: {}]   ;;  %s1668_s3 = inlined_call_operand.vmem [shape: f32[16,1], index: 3, kind: input, shape index: {}]   ;;  %s1669_s4 = inlined_call_operand.vmem [shape: bf16[2,8,72], index: 4, kind: input, shape index: {}]   ;;  %s1670_s5 = inlined_call_operand.vmem [shape: f32[2,8,1], index: 5, kind: input, shape index: {}]   ;;  %s1671_s6 = inlined_call_operand.vmem [shape: bf16[32,16], index: 6, kind: input, shape index: {}]   ;;  %s1672_s7 = inlined_call_operand.vmem [shape: f32[32,1], index: 7, kind: input, shape index: {}]   ;;  %s1673_s8 = inlined_call_operand.vmem [shape: bf16[32,16], index: 8, kind: input, shape index: {}]   ;;  %s1674_s9 = inlined_call_operand.hbm [shape: f32[2,32,256], index: 9, kind: output, shape index: {}]  }
   0x1   :  { %15 = vsyncpa [#allocation4], 0 }
   0x2   :  { %17 = vsyncpa [#allocation4 + $0x1], 0  ;;  %s1255_s30 = smov 0   ;;  %s1257_s10 = smov 0  }
   0x3   :  { %s1259_s11 = smov 0   ;;  %s1261_s12 = smov 0  }
   0x4 LB: > { %s1276_s13 = sadd.s32 4294967295, %s1190_s12   ;;  %s962_s14 = sadd.s32 4294967294, %s1190_s12   ;;  %s1190_s12 = sphi %s1261_s12, %s1680_s12   ;;  %s1186_s11 = sphi %s1259_s11, %s1679_s11   ;;  %s1182_s10 = sphi %s1257_s10, %s1678_s10   ;;  %s1178_s30 = sphi %s1255_s30, %s1677_s30  }
   0x5   : > { %s1280_s15 = sadd.s32 1, %s1190_s12   ;;  %s224_s16 = sadd.s32 1, %s1186_s11 }
   0x6   : > { %s221_s17 = ssub.s32 %s1190_s12, %s1280_s15  ;;  %p234_p0 = scmp.ne.s32.totalorder %s1186_s11, %s1182_s10 }
   0x7   : > { %p222_p1 = scmp.eq.s32.totalorder %s221_s17, 0  ;;  %p235_p2 = scmp.eq.s32.totalorder %s1276_s13, 1 }
   0x8   : > { %p240_p3 = scmp.ne.s32.totalorder %s1182_s10, %s1178_s30  ;;  %p241_p4 = scmp.eq.s32.totalorder %s962_s14, 1 }
   0x9   : > { %s1291_s18 = scalar_select %p222_p1, %s1186_s11, %s224_s16  }
   0xa   : > { %p1293_p5 = por %p235_p2, %p234_p0  ;;  %p1297_p6 = por %p241_p4, %p240_p3 }
   0xb   : > { %p963_p7 = scmp.ge.s32.totalorder %s1190_s12, 1  ;;  %p248_p8 = scmp.lt.s32.totalorder %s1190_s12, 3 }
   0xc   : > { %p1043_p9 = scmp.eq.s32.totalorder %s1276_s13, 0  ;;  %s259_s23 = sshll.u32 %s1666_s1, 4  ;;  %s260_s23 = int_to_ptr.hbm [resolvable:$true] %s259_s23 }
   0xd   : > { %p249_p10 = pnand %p963_p7, %p248_p8  ;;  %s1192_s24 = smov [#allocation2]  }
   0xe   : > { %s261_s25 = sshll.u32 %s1192_s24, 4  ;;  %s1193_s26 = smov 256   ;;  %s262_s25 = int_to_ptr.vmem [resolvable:$true] %s261_s25 }
   0xf   : > { %p1035_p11 = pneg %p249_p10  ;;  %s1194_s27 = smov 16  }
  0x10   : > { %306 = sbr.rel (%p249_p10) target bundleno = 939 (0x3ab), region = 56 }
  0x11   : > { %p1036_p12 = pnand %p1043_p9, %p1035_p11 }
  0x13   : > { %1038 = dma.hbm_to_vmem [thread:$0]  (!%p1036_p12), %s260_s23, 2304, %s262_s25, [#allocation3], %s1193_s26, %s1193_s26, %s1194_s27  }
  0x15   : > { %1169 = dma.done.wait (%p1043_p9), [#allocation3], 2304  }
  0x16   : > { %1171 = vsyncadd (%p1043_p9), [#allocation3], 4294964992  ;;  %p343_p13 = scmp.lt.s32.totalorder %s1276_s13, 1  ;;  %v1195_v0 = vmov 0   ;;  %v371_v6 = vld [vmem:[%s1668_s3] sm:$0xff]  ;;  %vm398_vm0 = vcmask 130048   ;;  %v500_v20 = vlaneseq }
  0x17   : > { %1091 = vset.pattern.permute.xlu0 %v1195_v0  ;;  %1092 = vset.pattern.permute.xlu2 %v1195_v0  ;;  %v1023_v8 = vld [vmem:[%s1667_s2] sm:$0xff]  ;;  %s1196_s25 = smov 111   ;;  %s1197_s26 = smov 113   ;;  %v372_v19 = vld [vmem:[%s1668_s3 + $0x8] sm:$0xff]  ;;  %vm593_vm2 = vcmask 1043456   ;;  %v1384_v36 = vld [vmem:[#allocation2 + $0x70] sm:$0xff] }
  0x18   : > { %s344_s28 = scalar_select %p343_p13, %s1276_s13, 1  ;;  %1093 = vset.pattern.permute.xlu1 %v1195_v0  ;;  %375 = vperm.xlu0 %1091, %v371_v6   ;;  %v583_v18 = vld [vmem:[%s1670_s5] sm:$0xff]  ;;  %v1368_v22 = vand.u32 127, %v500_v20  ;;  %v1373_v25 = vld [vmem:[#allocation2 + $0x88] sm:$0xff]  ;;  %v1386_v37 = vld [vmem:[#allocation2 + $0x78] sm:$0xff]  ;;  %vm589_vm10 = vcmask 588800  }
  0x19   : > { %s1198_s27 = smov 112   ;;  %s1201_s14 = smov 1   ;;  %v1371_v24 = vld [vmem:[#allocation2 + $0x80] sm:$0xff]  ;;  %v1391_v40 = vld [vmem:[#allocation2 + $0x68] sm:$0xff]  ;;  %v1408_v55 = vld [vmem:[#allocation2 + $0x50] sm:$0xff] }
  0x1a   : > { %s1020_s29 = sshll.u32 %s344_s28, 4  ;;  %s1199_s28 = smov 15   ;;  %vm551_vm1 = vcmp.lt.s32.totalorder %v1368_v22, 111  ;;  %vm544_vm3 = vcmp.lt.s32.totalorder %v1368_v22, 112  ;;  %vm537_vm4 = vcmp.lt.s32.totalorder %v1368_v22, 113  ;;  %v1389_v39 = vld [vmem:[#allocation2 + $0x60] sm:$0xff] }
  0x1b   : > { %s347_s17 = scalar_lea.vmem %s1665_s0, %s1020_s29  ;;  %s1200_s29 = smov 127   ;;  %vm530_vm5 = vcmp.lt.s32.totalorder %v1368_v22, 127  ;;  %v1406_v53 = vld [vmem:[#allocation2 + $0x40] sm:$0xff]  ;;  %v1410_v56 = vld [vmem:[#allocation2 + $0x58] sm:$0xff]  ;;  %v1412_v57 = vld [vmem:[#allocation2 + $0x48] sm:$0xff]  ;;  %vm523_vm6 = vcmp.lt.s32.totalorder %v1368_v22, 1 }
  0x1c   : > { %v977_v1 = vld [vmem:[%s347_s17] sm:$0xf]  ;;  %v1022_v2 = vld [vmem:[%s347_s17 + $0x4] sm:$0xf0]  ;;  %v1021_v3 = vld [vmem:[%s347_s17 + $0x4] sm:$0xf] }
  0x1d   : > { %v978_v4 = vor.u32 %v1022_v2, %v977_v1  ;;  %v979_v5 = vld [vmem:[%s347_s17 + $0x8] sm:$0xf0]  ;;  %s1202_s16 = smov 16   ;;  %s1203_s17 = smov 17   ;;  %vm516_vm7 = vcmp.lt.s32.totalorder %v1368_v22, 15  ;;  %vm502_vm8 = vcmp.lt.s32.totalorder %v1368_v22, 17 }
  0x1e   : > { %v982_v7 = vor.u32 %v1021_v3, %v979_v5  ;;  %v1425_v3 = vld [vmem:[#allocation2 + $0x30] sm:$0xff]  ;;  %vm509_vm9 = vcmp.lt.s32.totalorder %v1368_v22, 16  ;;  %s340_s21 = sand.u32 1, %s1182_s10  }
  0x1f   : > { %409 = vmatpush.bf16.msra.mxu2 %v978_v4  ;;  %s968_s22 = sshll.u32 %s340_s21, 6  ;;  %s873_s23 = scalar_lea.sflag [#allocation4], %s340_s21 }
  0x20   : > { %423 = vmatpush.bf16.msra.mxu3 %v982_v7 }
  0x22   : > { %983 = vmatmul.msk.bf16.vlgmr.msra.gmra.mxu2 %vm398_vm0, %v1023_v8 }
  0x23   : > { %465 = vmatpush.bf16.msrb.mxu2 %v978_v4  ;;  %984 = vmatmul.msk.bf16.vlgmr.msra.gmra.mxu3 %vm398_vm0, %v1023_v8  ;;  %v1427_v4 = vld [vmem:[#allocation2 + $0x38] sm:$0xff]  ;;  %v1432_v8 = vld [vmem:[#allocation2 + $0x28] sm:$0xff] }
  0x24   : > { %484 = vmatpush.bf16.msrb.mxu3 %v982_v7  ;;  %v1430_v7 = vld [vmem:[#allocation2 + $0x20] sm:$0xff] }
  0x8a   : > { %v376_v9 = vpop.permute.xlu0 %375 }
  0xa5   : > { %v411_v10 = vpop.f32.mrf.mxu2 }
  0xa6   : > { %v412_v11 = vadd.f32 %v411_v10, %v376_v9  ;;  %v425_v12 = vpop.f32.mrf.mxu3 }
  0xa7   : > { %v426_v13 = vadd.f32 %v425_v12, %v376_v9 }
  0xa8   : > { %v430_v14 = vmax.f32 %v412_v11, 0.0 }
  0xa9   : > { %v431_v15 = vmax.f32 %v426_v13, 0.0 }
  0xaa   : > { %v1326_v16 = vmin.f32 %v430_v14, 20.0 }
  0xab   : > { %v1328_v17 = vmin.f32 %v431_v15, 20.0 }
  0xac   : > { %547 = vrot.lane.b32.xlu0 %v1326_v16, %s1196_s25  ;;  %v562_v63 = vmul.f32 %v1326_v16, %v1406_v53 }
  0xad   : > { %535 = vrot.lane.b32.xlu2 %v1328_v17, %s1197_s26  ;;  %549 = vrot.lane.b32.xlu1 %v1328_v17, %s1196_s25  ;;  %v563_v0 = vmul.f32 %v1328_v17, %v1412_v57 }
  0xb4   : > { %542 = vrot.lane.b32.xlu0 %v1328_v17, %s1198_s27 }
  0xb5   : > { %540 = vrot.lane.b32.xlu2 %v1326_v16, %s1198_s27  ;;  %533 = vrot.lane.b32.xlu1 %v1326_v16, %s1197_s26 }
  0xbc   : > { %512 = vrot.lane.b32.xlu0 %v1326_v16, %s1199_s28 }
  0xbd   : > { %528 = vrot.lane.b32.xlu2 %v1328_v17, %s1200_s29  ;;  %526 = vrot.lane.b32.xlu1 %v1326_v16, %s1200_s29 }
  0xc4   : > { %521 = vrot.lane.b32.xlu0 %v1328_v17, %s1201_s14 }
  0xc5   : > { %519 = vrot.lane.b32.xlu2 %v1326_v16, %s1201_s14  ;;  %514 = vrot.lane.b32.xlu1 %v1328_v17, %s1199_s28 }
  0xcc   : > { %505 = vrot.lane.b32.xlu0 %v1326_v16, %s1202_s16 }
  0xcd   : > { %498 = vrot.lane.b32.xlu2 %v1328_v17, %s1203_s17  ;;  %496 = vrot.lane.b32.xlu1 %v1326_v16, %s1203_s17 }
  0xd4   : > { %586 = vperm.xlu0 %1091, %v583_v18  }
  0xd5   : > { %380 = vperm.xlu2 %1092, %v372_v19   ;;  %507 = vrot.lane.b32.xlu1 %v1328_v17, %s1202_s16 }
 0x107   : > { %v536_v21 = vpop.permute.xlu2 %535 }
 0x10f   : > { %v541_v31 = vpop.permute.xlu2 %540 }
 0x117   : > { %v529_v52 = vpop.permute.xlu2 %528 }
 0x11e   : > { %v548_v23 = vpop.permute.xlu0 %547 }
 0x11f   : > { %v550_v26 = vpop.permute.xlu1 %549  ;;  %v520_v5 = vpop.permute.xlu2 %519 }
 0x120   : > { %v552_v27 = vsel %vm551_vm1, %v548_v23, %v550_v26  ;;  %v553_v28 = vsel %vm551_vm1, %v550_v26, %v548_v23  ;;  %v1447_v23 = vld [vmem:[#allocation2] sm:$0xff]  ;;  %v1450_v26 = vld [vmem:[#allocation2 + $0x8] sm:$0xff] }
 0x121   : > { %v570_v29 = vmul.f32 %v552_v27, %v1371_v24  ;;  %v571_v30 = vmul.f32 %v553_v28, %v1373_v25 }
 0x123   : > { %v580_v32 = vpack.c.bf16 %v570_v29, %v570_v29  ;;  %v581_v33 = vpack.c.bf16 %v571_v30, %v571_v30  ;;  %v1456_v29 = vld [vmem:[#allocation2 + $0x10] sm:$0xff]  ;;  %v1458_v30 = vld [vmem:[#allocation2 + $0x18] sm:$0xff] }
 0x125   : > { %v595_v34 = vsel %vm593_vm2, %v580_v32, 0  ;;  %v598_v35 = vsel %vm593_vm2, %v581_v33, 0 }
 0x126   : > { %603 = vmatpush.bf16.msra.mxu0 %v595_v34  ;;  %616 = vmatpush.bf16.msra.mxu1 %v598_v35  ;;  %v543_v38 = vpop.permute.xlu0 %542 }
 0x127   : > { %v545_v41 = vsel %vm544_vm3, %v541_v31, %v543_v38  ;;  %v546_v42 = vsel %vm544_vm3, %v543_v38, %v541_v31  ;;  %v534_v43 = vpop.permute.xlu1 %533 }
 0x128   : > { %v568_v44 = vmul.f32 %v545_v41, %v1384_v36  ;;  %v569_v45 = vmul.f32 %v546_v42, %v1386_v37  ;;  %v538_v46 = vsel %vm537_vm4, %v534_v43, %v536_v21  ;;  %v539_v47 = vsel %vm537_vm4, %v536_v21, %v534_v43  ;;  %v499_v21 = vpop.permute.xlu2 %498 }
 0x129   : > { %v566_v48 = vmul.f32 %v538_v46, %v1389_v39  ;;  %v567_v49 = vmul.f32 %v539_v47, %v1391_v40  ;;  %v413_v47 = vpop.f32.mrf.mxu2 }
 0x12b   : > { %v578_v50 = vpack.c.bf16 %v568_v44, %v566_v48  ;;  %v579_v51 = vpack.c.bf16 %v569_v45, %v567_v49  ;;  %v582_v45 = vld [vmem:[%s1669_s4] sm:$0xf]  ;;  %v427_v48 = vpop.f32.mrf.mxu3 }
 0x12d   : > { %604 = vmatpush.bf16.msra.mxu0 %v578_v50  ;;  %617 = vmatpush.bf16.msra.mxu1 %v579_v51 }
 0x12e   : > { %v513_v54 = vpop.permute.xlu0 %512 }
 0x12f   : > { %v527_v58 = vpop.permute.xlu1 %526 }
 0x130   : > { %v531_v59 = vsel %vm530_vm5, %v527_v58, %v529_v52  ;;  %v532_v60 = vsel %vm530_vm5, %v529_v52, %v527_v58  ;;  %v381_v46 = vpop.permute.xlu2 %380 }
 0x131   : > { %v564_v61 = vmul.f32 %v531_v59, %v1408_v55  ;;  %v565_v62 = vmul.f32 %v532_v60, %v1410_v56  ;;  %v414_v49 = vadd.f32 %v413_v47, %v381_v46  ;;  %v428_v50 = vadd.f32 %v427_v48, %v381_v46 }
 0x133   : > { %v576_v1 = vpack.c.bf16 %v564_v61, %v562_v63  ;;  %v577_v2 = vpack.c.bf16 %v565_v62, %v563_v0  ;;  %v432_v58 = vmax.f32 %v414_v49, 0.0  ;;  %v433_v59 = vmax.f32 %v428_v50, 0.0 }
 0x135   : > { %605 = vmatpush.bf16.msra.mxu0 %v576_v1  ;;  %618 = vmatpush.bf16.msra.mxu1 %v577_v2  ;;  %v436_v0 = vmin.f32 %v432_v58, 20.0  ;;  %v437_v1 = vmin.f32 %v433_v59, 20.0 }
 0x136   : > { %v522_v6 = vpop.permute.xlu0 %521 }
 0x137   : > { %v524_v9 = vsel %vm523_vm6, %v520_v5, %v522_v6  ;;  %v525_v10 = vsel %vm523_vm6, %v522_v6, %v520_v5  ;;  %v515_v11 = vpop.permute.xlu1 %514 }
 0x138   : > { %v560_v12 = vmul.f32 %v525_v10, %v1425_v3  ;;  %v561_v13 = vmul.f32 %v524_v9, %v1427_v4  ;;  %v517_v14 = vsel %vm516_vm7, %v513_v54, %v515_v11  ;;  %v518_v15 = vsel %vm516_vm7, %v515_v11, %v513_v54 }
 0x139   : > { %v558_v16 = vmul.f32 %v518_v15, %v1430_v7  ;;  %v559_v17 = vmul.f32 %v517_v14, %v1432_v8  ;;  %v819_v14 = vld [vmem:[%s1672_s7 + $0x18] sm:$0xff]  ;;  %v818_v15 = vld [vmem:[%s1672_s7 + $0x10] sm:$0xff] }
 0x13b   : > { %v574_v18 = vpack.c.bf16 %v560_v12, %v558_v16  ;;  %v575_v19 = vpack.c.bf16 %v561_v13, %v559_v17  ;;  %v816_v12 = vld [vmem:[%s1672_s7] sm:$0xff]  ;;  %v1000_v13 = vld [vmem:[%s1670_s5 + $0x8] sm:$0xff] }
 0x13c   : > { %v1024_v16 = vld [vmem:[%s1673_s8] sm:$0xff]  ;;  %v1025_v17 = vld [vmem:[%s1673_s8 + $0x8] sm:$0xff] }
 0x13d   : > { %606 = vmatpush.bf16.msra.mxu0 %v574_v18  ;;  %619 = vmatpush.bf16.msra.mxu1 %v575_v19 }
 0x13e   : > { %v506_v31 = vpop.permute.xlu0 %505  ;;  %993 = vmatmul.msk.bf16.vlgmr.msrb.gmra.mxu2 %vm398_vm0, %v1024_v16  ;;  %995 = vmatmul.msk.bf16.vlgmr.msrb.gmra.mxu3 %vm398_vm0, %v1024_v16 }
 0x13f   : > { %v497_v20 = vpop.permute.xlu1 %496 }
 0x140   : > { %v503_v27 = vsel %vm502_vm8, %v497_v20, %v499_v21  ;;  %v504_v28 = vsel %vm502_vm8, %v499_v21, %v497_v20 }
 0x141   : > { %v554_v35 = vmul.f32 %v504_v28, %v1447_v23  ;;  %v555_v38 = vmul.f32 %v503_v27, %v1450_v26 }
 0x146   : > { %v587_v51 = vpop.permute.xlu0 %586 }
 0x147   : > { %v508_v32 = vpop.permute.xlu1 %507 }
 0x148   : > { %v510_v33 = vsel %vm509_vm9, %v506_v31, %v508_v32  ;;  %v511_v34 = vsel %vm509_vm9, %v508_v32, %v506_v31 }
 0x149   : > { %v556_v41 = vmul.f32 %v511_v34, %v1456_v29  ;;  %v557_v42 = vmul.f32 %v510_v33, %v1458_v30 }
 0x14b   : > { %v572_v43 = vpack.c.bf16 %v556_v41, %v554_v35  ;;  %v573_v44 = vpack.c.bf16 %v557_v42, %v555_v38 }
 0x14d   : > { %607 = vmatpush.bf16.msra.mxu0 %v572_v43  ;;  %620 = vmatpush.bf16.msra.mxu1 %v573_v44 }
 0x14e   : > { %994 = vmatmul.msk.bf16.gmra.mxu2 %vm398_vm0, %v1025_v17  ;;  %996 = vmatmul.msk.bf16.gmra.mxu3 %vm398_vm0, %v1025_v17 }
 0x150   : > { %997 = vmatmul.msk.bf16.vlgmr.msra.gmra.mxu0 %vm589_vm10, %v582_v45  ;;  %998 = vmatmul.msk.bf16.vlgmr.msra.gmra.mxu1 %vm589_vm10, %v582_v45 }
 0x1c1   : > { %v467_v22 = vpop.f32.mrf.mxu2 }
 0x1cd   : > { %v609_v52 = vpop.f32.mrf.mxu0  ;;  %v622_v54 = vpop.f32.mrf.mxu1 }
 0x1ce   : > { %v610_v60 = vadd.f32 %v609_v52, %v587_v51  ;;  %v623_v61 = vadd.f32 %v622_v54, %v587_v51 }
 0x1d0   : > { %v626_v62 = vmax.f32 %v610_v60, 0.0  ;;  %v627_v63 = vmax.f32 %v623_v61, 0.0 }
 0x1d2   : > { %v1473_v2 = vmin.f32 %v626_v62, 20.0  ;;  %v1475_v5 = vmin.f32 %v627_v63, 20.0 }
 0x1d4   : > { %v1478_v6 = vadd.f32 %v1473_v2, %v436_v0  ;;  %v1481_v9 = vadd.f32 %v1475_v5, %v437_v1 }
 0x1d5   : > { %v611_v10 = vpop.f32.mrf.mxu0  ;;  %v624_v11 = vpop.f32.mrf.mxu1 }
 0x1d6   : > { %662 = vrot.lane.b32.xlu0 %v1478_v6, %s1197_s26  ;;  %674 = vrot.lane.b32.xlu1 %v1478_v6, %s1196_s25 }
 0x1d7   : > { %676 = vrot.lane.b32.xlu2 %v1481_v9, %s1196_s25  ;;  %s1618_s25 = scalar_lea.vmem [#allocation5], %s968_s22 }
 0x1de   : > { %670 = vrot.lane.b32.xlu0 %v1481_v9, %s1198_s27  ;;  %664 = vrot.lane.b32.xlu1 %v1481_v9, %s1197_s26  ;;  %s1028_s26 = sshll.u32 %s1276_s13, 6  ;;  %s885_s13 = sshll.u32 %s1618_s25, 4  ;;  %s886_s13 = int_to_ptr.vmem [resolvable:$true] %s885_s13 }
 0x1df   : > { %668 = vrot.lane.b32.xlu2 %v1478_v6, %s1198_s27  ;;  %s1144_s27 = scalar_lea.hbm %s1674_s9, 128 }
 0x1e6   : > { %644 = vrot.lane.b32.xlu0 %v1478_v6, %s1199_s28  ;;  %656 = vrot.lane.b32.xlu1 %v1478_v6, %s1200_s29 }
 0x1e7   : > { %658 = vrot.lane.b32.xlu2 %v1481_v9, %s1200_s29 }
 0x1ee   : > { %652 = vrot.lane.b32.xlu0 %v1481_v9, %s1201_s14  ;;  %646 = vrot.lane.b32.xlu1 %v1481_v9, %s1199_s28  ;;  %s884_s28 = scalar_lea.hbm %s1674_s9, %s1028_s26 }
 0x1ef   : > { %650 = vrot.lane.b32.xlu2 %v1478_v6, %s1201_s14  ;;  %s887_s14 = sshll.u32 %s884_s28, 4  ;;  %s888_s14 = int_to_ptr.hbm [resolvable:$true] %s887_s14 }
 0x1f0   : > { %s1138_s24 = sshra.s32 %s888_s14, 4  ;;  %s1139_s24 = int_to_ptr.hbm [resolvable:$true] %s1138_s24 }
 0x1f1   : > { %p1145_p3 = scmp.lt.s32.totalorder %s1139_s24, %s1674_s9 }
 0x1f6   : > { %638 = vrot.lane.b32.xlu0 %v1478_v6, %s1202_s16  ;;  %632 = vrot.lane.b32.xlu1 %v1478_v6, %s1203_s17 }
 0x1f7   : > { %634 = vrot.lane.b32.xlu2 %v1481_v9, %s1203_s17  ;;  %s1140_s17 = scalar_lea.hbm %s1139_s24, 64 }
 0x1f8   : > { %p1141_p0 = scmp.ne.s32.totalorder %s1139_s24, %s1140_s17  ;;  %p1146_p4 = scmp.lt.s32.totalorder %s1144_s27, %s1140_s17 }
 0x1fa   : > { %p1142_p1 = pnand %p1141_p0, %p1293_p5  ;;  %p1147_p7 = por %p1146_p4, %p1145_p3 }
 0x1fc   : > { %p1143_p2 = pneg %p1142_p1 }
 0x1fe   : > { %822 = vperm.xlu0 %1091, %v816_v12   ;;  %640 = vrot.lane.b32.xlu1 %v1481_v9, %s1202_s16  ;;  %p1148_p8 = pnand %p1147_p7, %p1143_p2 }
 0x1ff   : > { %714 = vperm.xlu2 %1092, %v1000_v13  }
 0x206   : > { %837 = vperm.xlu0 %1091, %v819_v14  }
 0x207   : > { %832 = vperm.xlu2 %1092, %v818_v15  }
 0x231   : > { %v677_v18 = vpop.permute.xlu2 %676 }
 0x239   : > { %v669_v32 = vpop.permute.xlu2 %668 }
 0x241   : > { %v659_v51 = vpop.permute.xlu2 %658 }
 0x248   : > { %v663_v19 = vpop.permute.xlu0 %662  ;;  %v675_v20 = vpop.permute.xlu1 %674 }
 0x249   : > { %v678_v21 = vsel %vm551_vm1, %v675_v20, %v677_v18  ;;  %v679_v27 = vsel %vm551_vm1, %v677_v18, %v675_v20  ;;  %v651_v62 = vpop.permute.xlu2 %650 }
 0x24a   : > { %v696_v28 = vmul.f32 %v678_v21, %v1371_v24  ;;  %v697_v31 = vmul.f32 %v679_v27, %v1373_v25 }
 0x24c   : > { %v706_v33 = vpack.c.bf16 %v696_v28, %v696_v28  ;;  %v707_v34 = vpack.c.bf16 %v697_v31, %v697_v31  ;;  %v999_v28 = vld [vmem:[%s1669_s4 + $0x4] sm:$0xf]  ;;  %v469_v31 = vpop.f32.mrf.mxu2 }
 0x24e   : > { %v721_v35 = vsel %vm593_vm2, %v706_v33, 0  ;;  %v724_v38 = vsel %vm593_vm2, %v707_v34, 0  ;;  %v817_v34 = vld [vmem:[%s1672_s7 + $0x8] sm:$0xff] }
 0x24f   : > { %729 = vmatpush.bf16.msra.mxu2 %v721_v35  ;;  %742 = vmatpush.bf16.msra.mxu3 %v724_v38 }
 0x250   : > { %v671_v41 = vpop.permute.xlu0 %670  ;;  %v665_v42 = vpop.permute.xlu1 %664  ;;  %827 = vperm.xlu1 %1093, %v817_v34  }
 0x251   : > { %v672_v43 = vsel %vm544_vm3, %v669_v32, %v671_v41  ;;  %v673_v44 = vsel %vm544_vm3, %v671_v41, %v669_v32  ;;  %v666_v24 = vsel %vm537_vm4, %v663_v19, %v665_v42  ;;  %v667_v25 = vsel %vm537_vm4, %v665_v42, %v663_v19  ;;  %v635_v14 = vpop.permute.xlu2 %634 }
 0x252   : > { %v694_v45 = vmul.f32 %v672_v43, %v1384_v36  ;;  %v695_v46 = vmul.f32 %v673_v44, %v1386_v37  ;;  %v692_v47 = vmul.f32 %v666_v24, %v1389_v39  ;;  %v693_v48 = vmul.f32 %v667_v25, %v1391_v40 }
 0x253   : > { %v688_v39 = vmul.f32 %v1478_v6, %v1406_v53  ;;  %v689_v40 = vmul.f32 %v1481_v9, %v1412_v57 }
 0x254   : > { %v704_v49 = vpack.c.bf16 %v694_v45, %v692_v47  ;;  %v705_v50 = vpack.c.bf16 %v695_v46, %v693_v48  ;;  %v472_v32 = vpop.f32.mrf.mxu2 }
 0x256   : > { %730 = vmatpush.bf16.msra.mxu2 %v704_v49  ;;  %743 = vmatpush.bf16.msra.mxu3 %v705_v50  ;;  %v1026_v50 = vld [vmem:[%s1671_s6] sm:$0xff] }
 0x258   : > { %v645_v52 = vpop.permute.xlu0 %644  ;;  %v657_v54 = vpop.permute.xlu1 %656 }
 0x259   : > { %v660_v58 = vsel %vm530_vm5, %v657_v54, %v659_v51  ;;  %v661_v59 = vsel %vm530_vm5, %v659_v51, %v657_v54  ;;  %v715_v35 = vpop.permute.xlu2 %714  ;;  %v1027_v51 = vld [vmem:[%s1671_s6 + $0x8] sm:$0xff] }
 0x25a   : > { %v690_v36 = vmul.f32 %v660_v58, %v1408_v55  ;;  %v691_v37 = vmul.f32 %v661_v59, %v1410_v56 }
 0x25c   : > { %v702_v60 = vpack.c.bf16 %v690_v36, %v688_v39  ;;  %v703_v61 = vpack.c.bf16 %v691_v37, %v689_v40  ;;  %v1596_v33 = vpop.f32.mrf.mxu2 }
 0x25e   : > { %731 = vmatpush.bf16.msra.mxu2 %v702_v60  ;;  %744 = vmatpush.bf16.msra.mxu3 %v703_v61 }
 0x260   : > { %v653_v63 = vpop.permute.xlu0 %652  ;;  %v647_v0 = vpop.permute.xlu1 %646 }
 0x261   : > { %v654_v1 = vsel %vm523_vm6, %v651_v62, %v653_v63  ;;  %v655_v55 = vsel %vm523_vm6, %v653_v63, %v651_v62  ;;  %v648_v56 = vsel %vm516_vm7, %v645_v52, %v647_v0  ;;  %v649_v53 = vsel %vm516_vm7, %v647_v0, %v645_v52 }
 0x262   : > { %v686_v57 = vmul.f32 %v655_v55, %v1425_v3  ;;  %v687_v6 = vmul.f32 %v654_v1, %v1427_v4  ;;  %v684_v9 = vmul.f32 %v649_v53, %v1430_v7  ;;  %v685_v10 = vmul.f32 %v648_v56, %v1432_v8 }
 0x264   : > { %v700_v11 = vpack.c.bf16 %v686_v57, %v684_v9  ;;  %v701_v12 = vpack.c.bf16 %v687_v6, %v685_v10 }
 0x266   : > { %732 = vmatpush.bf16.msra.mxu2 %v700_v11  ;;  %745 = vmatpush.bf16.msra.mxu3 %v701_v12 }
 0x268   : > { %v633_v13 = vpop.permute.xlu1 %632  ;;  %v639_v17 = vpop.permute.xlu0 %638 }
 0x269   : > { %v636_v15 = vsel %vm502_vm8, %v633_v13, %v635_v14  ;;  %v637_v16 = vsel %vm502_vm8, %v635_v14, %v633_v13  ;;  %v833_v14 = vpop.permute.xlu2 %832 }
 0x26a   : > { %v680_v8 = vmul.f32 %v637_v16, %v1447_v23  ;;  %v681_v18 = vmul.f32 %v636_v15, %v1450_v26  ;;  %v486_v23 = vpop.f32.mrf.mxu3 }
 0x270   : > { %v641_v3 = vpop.permute.xlu1 %640  ;;  %v823_v58 = vpop.permute.xlu0 %822 }
 0x271   : > { %v642_v4 = vsel %vm509_vm9, %v639_v17, %v641_v3  ;;  %v643_v7 = vsel %vm509_vm9, %v641_v3, %v639_v17 }
 0x272   : > { %v682_v19 = vmul.f32 %v643_v7, %v1456_v29  ;;  %v683_v20 = vmul.f32 %v642_v4, %v1458_v30  ;;  %v488_v26 = vpop.f32.mrf.mxu3 }
 0x274   : > { %v698_v21 = vpack.c.bf16 %v682_v19, %v680_v8  ;;  %v699_v27 = vpack.c.bf16 %v683_v20, %v681_v18 }
 0x276   : > { %733 = vmatpush.bf16.msra.mxu2 %v698_v21  ;;  %746 = vmatpush.bf16.msra.mxu3 %v699_v27 }
 0x278   : > { %v838_v21 = vpop.permute.xlu0 %837 }
 0x279   : > { %1001 = vmatmul.msk.bf16.vlgmr.msra.gmra.mxu2 %vm589_vm10, %v999_v28  ;;  %1002 = vmatmul.msk.bf16.vlgmr.msra.gmra.mxu3 %vm589_vm10, %v999_v28 }
 0x27a   : > { %v491_v29 = vpop.f32.mrf.mxu3 }
 0x282   : > { %v1598_v30 = vpop.f32.mrf.mxu3 }
 0x2c2   : > { %v828_v61 = vpop.permute.xlu1 %827 }
 0x2fc   : > { %v735_v38 = vpop.f32.mrf.mxu2  ;;  %v748_v41 = vpop.f32.mrf.mxu3 }
 0x2fd   : > { %v736_v42 = vadd.f32 %v735_v38, %v715_v35  ;;  %v749_v43 = vadd.f32 %v748_v41, %v715_v35 }
 0x2ff   : > { %v752_v44 = vmax.f32 %v736_v42, 0.0  ;;  %v753_v24 = vmax.f32 %v749_v43, 0.0 }
 0x301   : > { %v754_v25 = vmin.f32 %v752_v44, 20.0  ;;  %v755_v45 = vmin.f32 %v753_v24, 20.0 }
 0x303   : > { %v756_v46 = vpack.c.bf16 %v754_v25, %v1473_v2  ;;  %v757_v47 = vpack.c.bf16 %v755_v45, %v1475_v5 }
 0x304   : > { %v737_v48 = vpop.f32.mrf.mxu2  ;;  %v750_v49 = vpop.f32.mrf.mxu3 }
 0x305   : > { %785 = vmatpush.bf16.msrb.mxu0 %v756_v46  ;;  %804 = vmatpush.bf16.msrb.mxu1 %v757_v47 }
 0x308   : > { %1011 = vmatmul.msk.bf16.vlgmr.msrb.gmra.mxu0 %vm398_vm0, %v1026_v50  ;;  %1013 = vmatmul.msk.bf16.vlgmr.msrb.gmra.mxu1 %vm398_vm0, %v1026_v50 }
 0x318   : > { %1012 = vmatmul.msk.bf16.gmra.mxu0 %vm398_vm0, %v1027_v51  ;;  %1014 = vmatmul.msk.bf16.gmra.mxu1 %vm398_vm0, %v1027_v51 }
 0x385   : > { %v787_v2 = vpop.f32.mrf.mxu0  ;;  %v806_v5 = vpop.f32.mrf.mxu1 }
 0x386   : > { %v788_v52 = vadd.f32 %v787_v2, %v467_v22  ;;  %v807_v54 = vadd.f32 %v806_v5, %v486_v23 }
 0x388   : > { %v840_v59 = vadd.f32 %v823_v58, %v788_v52  ;;  %v841_v36 = vadd.f32 %v823_v58, %v807_v54 }
 0x38a   : > { %v848_v37 = vmax.f32 %v840_v59, 0.0  ;;  %v849_v39 = vmax.f32 %v841_v36, 0.0 }
 0x38c   : > { %v856_v40 = vmin.f32 %v848_v37, 20.0  ;;  %v857_v60 = vmin.f32 %v849_v39, 20.0 }
 0x38d   : > { %v789_v62 = vpop.f32.mrf.mxu0  ;;  %v808_v63 = vpop.f32.mrf.mxu1 }
 0x38e   : > { %864 = vst [vmem:[%s1618_s25] sm:$0xff] %v856_v40  ;;  %v790_v0 = vadd.f32 %v789_v62, %v469_v31  ;;  %v809_v1 = vadd.f32 %v808_v63, %v488_v26 }
 0x38f   : > { %865 = vst [vmem:[%s1618_s25 + $0x8] sm:$0xff] %v857_v60 }
 0x390   : > { %v842_v55 = vadd.f32 %v828_v61, %v790_v0  ;;  %v843_v56 = vadd.f32 %v828_v61, %v809_v1 }
 0x392   : > { %v850_v53 = vmax.f32 %v842_v55, 0.0  ;;  %v851_v57 = vmax.f32 %v843_v56, 0.0 }
 0x394   : > { %v858_v6 = vmin.f32 %v850_v53, 20.0  ;;  %v859_v9 = vmin.f32 %v851_v57, 20.0 }
 0x395   : > { %v792_v10 = vpop.f32.mrf.mxu0  ;;  %v811_v11 = vpop.f32.mrf.mxu1 }
 0x396   : > { %866 = vst [vmem:[%s1618_s25 + $0x10] sm:$0xff] %v858_v6  ;;  %v793_v12 = vadd.f32 %v792_v10, %v472_v32  ;;  %v812_v13 = vadd.f32 %v811_v11, %v491_v29 }
 0x397   : > { %867 = vst [vmem:[%s1618_s25 + $0x18] sm:$0xff] %v859_v9 }
 0x398   : > { %v844_v15 = vadd.f32 %v833_v14, %v793_v12  ;;  %v845_v16 = vadd.f32 %v833_v14, %v812_v13 }
 0x39a   : > { %v852_v17 = vmax.f32 %v844_v15, 0.0  ;;  %v853_v3 = vmax.f32 %v845_v16, 0.0 }
 0x39c   : > { %v860_v4 = vmin.f32 %v852_v17, 20.0  ;;  %v861_v7 = vmin.f32 %v853_v3, 20.0 }
 0x39d   : > { %v794_v8 = vpop.f32.mrf.mxu0  ;;  %v813_v18 = vpop.f32.mrf.mxu1 }
 0x39e   : > { %868 = vst [vmem:[%s1618_s25 + $0x20] sm:$0xff] %v860_v4  ;;  %v795_v19 = vadd.f32 %v794_v8, %v1596_v33  ;;  %v814_v20 = vadd.f32 %v813_v18, %v1598_v30 }
 0x39f   : > { %869 = vst [vmem:[%s1618_s25 + $0x28] sm:$0xff] %v861_v7 }
 0x3a0   : > { %v846_v27 = vadd.f32 %v838_v21, %v795_v19  ;;  %v847_v28 = vadd.f32 %v838_v21, %v814_v20 }
 0x3a2   : > { %v854_v22 = vmax.f32 %v846_v27, 0.0  ;;  %v855_v23 = vmax.f32 %v847_v28, 0.0 }
 0x3a4   : > { %v862_v31 = vmin.f32 %v854_v22, 20.0  ;;  %v863_v26 = vmin.f32 %v855_v23, 20.0 }
 0x3a6   : > { %870 = vst [vmem:[%s1618_s25 + $0x30] sm:$0xff] %v862_v31 }
 0x3a7   : > { %871 = vst [vmem:[%s1618_s25 + $0x38] sm:$0xff] %v863_v26 }
 0x3a8   : > { %1151 = shalt.err (!%p1148_p8)
}
 0x3a9   : > { %s1204_s21 = smov 256  }
 0x3aa   : > { %1033 = dma.vmem_to_hbm [thread:$0]  (%p1293_p5), %s886_s13, 1024, %s888_s14, %s873_s23, %s1204_s21, %s1204_s21, %s1202_s16  }
 0x3ab PF: > { %p1045_p9 = scmp.ge.s32.totalorder %s1190_s12, 2  ;;  %s902_s25 = sand.u32 1, %s1178_s30  }
 0x3ac   : > { %s903_s22 = scalar_lea.sflag [#allocation4], %s902_s25 }
 0x3ad   : > { %p1040_p10 = pnand %p1045_p9, %p1297_p6 }
 0x3af   : > { %p1041_p11 = pneg %p1040_p10 }
 0x3b1   : > { %1173 = dma.done.wait (%p1041_p11), %s903_s22, 1024  }
 0x3b2   : > { %1175 = vsyncadd (%p1041_p11), %s903_s22, 4294966272  ;;  %p20_p12 = scmp.ge.s32.totalorder %s1280_s15, 4   ;;  %s1677_s30 = smov %s1182_s10 }
 0x3b3   : > { %s1678_s10 = smov %s1186_s11  ;;  %s1679_s11 = smov %s1291_s18 }
 0x3b4   : > { %s1680_s12 = smov %s1280_s15  ;;  %22 = sbr.rel (!%p20_p12) target bundleno = 4 (0x4), region = 98 }
 0x3b9   :  { %909 = vsyncpa [#allocation3], 1 }
 0x3ba   :  { %911 = vsyncpa [#allocation3 + $0x1], 1 }
 0x3bb   :  { %912 = vsyncpa [#allocation4], 1 }
 0x3bc   :  { %914 = vsyncpa [#allocation4 + $0x1], 1 }

</bundles_post_ra>
